<compile_context>
chip_gen: v6e
topology: v6e:2x2x1
jax: 0.10.0
libtpu: 0.0.40
codegen_flags: <defaults>
</compile_context>

<pallas_src>
import functools

import jax
import jax.numpy as jnp
from jax.experimental import pallas as pl
from jax.experimental.pallas import tpu as pltpu


MXU_DTYPE = jnp.bfloat16   # MXU operand dtype (f32 accumulation retained)
ACT_DTYPE = jnp.bfloat16   # inter-kernel activation storage dtype

_VMEM_LIMIT = 48 * 1024 * 1024  # > v5e's 16 MiB default, < v7x's 64 MiB physical


def _pick_tile(dim, prefs):
    """Largest preferred tile that evenly divides dim, else the full dim."""
    for p in prefs:
        if dim >= p and dim % p == 0:
            return p
    return dim


# ----------------------------- in-kernel math helpers -----------------------------

def _erf_approx(x):
    # Abramowitz & Stegun 7.1.26 (exp-based), |err| < 1.5e-7; reciprocal on the EUP.
    a1, a2, a3, a4, a5 = 0.254829592, -0.284496736, 1.421413741, -1.453152027, 1.061405429
    p = 0.3275911
    sgn = jnp.where(x >= 0.0, 1.0, -1.0)
    ax = jnp.abs(x)
    t = pl.reciprocal(1.0 + p * ax, approx=True)
    poly = ((((a5 * t + a4) * t + a3) * t + a2) * t + a1) * t
    return sgn * (1.0 - poly * jnp.exp(-ax * ax))


def _gelu_exact(y):
    # nn.GELU default (exact erf variant).
    return 0.5 * y * (1.0 + _erf_approx(y * 0.7071067811865476))


def _ln_rows(x, g, b, eps):
    # LayerNorm over the last axis (biased variance, like torch.nn.LayerNorm), f32 stats.
    x = x.astype(jnp.float32)
    mean = jnp.mean(x, axis=-1, keepdims=True)
    xc = x - mean
    var = jnp.mean(xc * xc, axis=-1, keepdims=True)
    return xc * jax.lax.rsqrt(var + eps) * g + b


# ----------------------------- fused linear (matmul + bias [+ GELU]) -----------------------------

def _linear_kernel(x_ref, w_ref, b_ref, o_ref, acc_ref, *, activation, mxu_dtype):
    @pl.when(pl.program_id(2) == 0)
    def _():
        acc_ref[...] = jnp.zeros_like(acc_ref)

    acc_ref[...] += jnp.dot(
        x_ref[...].astype(mxu_dtype),
        w_ref[...].astype(mxu_dtype),
        preferred_element_type=jnp.float32,
    )

    @pl.when(pl.program_id(2) == pl.num_programs(2) - 1)
    def _():
        y = acc_ref[...] + b_ref[...]
        if activation == "gelu":
            y = _gelu_exact(y)
        o_ref[...] = y.astype(o_ref.dtype)


def linear(x, w, b, activation=None, out_dtype=None):
    m, k = x.shape
    n = w.shape[1]
    tm = _pick_tile(m, (512, 256, 128, 64, 32, 16, 8))
    tn = _pick_tile(n, (512, 256, 128))
    tk = _pick_tile(k, (1024, 512, 256, 128))
    grid = (m // tm, n // tn, k // tk)
    return pl.pallas_call(
        functools.partial(_linear_kernel, activation=activation, mxu_dtype=MXU_DTYPE),
        grid=grid,
        in_specs=[
            pl.BlockSpec((tm, tk), lambda i, j, kk: (i, kk)),
            pl.BlockSpec((tk, tn), lambda i, j, kk: (kk, j)),
            pl.BlockSpec((1, tn), lambda i, j, kk: (0, j)),
        ],
        out_specs=pl.BlockSpec((tm, tn), lambda i, j, kk: (i, j)),
        out_shape=jax.ShapeDtypeStruct((m, n), out_dtype or ACT_DTYPE),
        scratch_shapes=[pltpu.VMEM((tm, tn), jnp.float32)],
        compiler_params=pltpu.CompilerParams(
            dimension_semantics=("parallel", "parallel", "arbitrary"),
            vmem_limit_bytes=_VMEM_LIMIT,
        ),
    )(x, w, b.reshape(1, n))


# ------------------- fused linear + bias + residual-add + post-LayerNorm -------------------
# out = residual + LayerNorm(x @ w + b)   (ResPost block epilogue, tn == full width)

def _linear_res_ln_kernel(x_ref, w_ref, b_ref, res_ref, g_ref, bln_ref, o_ref, acc_ref,
                          *, eps, mxu_dtype):
    @pl.when(pl.program_id(2) == 0)
    def _():
        acc_ref[...] = jnp.zeros_like(acc_ref)

    acc_ref[...] += jnp.dot(
        x_ref[...].astype(mxu_dtype),
        w_ref[...].astype(mxu_dtype),
        preferred_element_type=jnp.float32,
    )

    @pl.when(pl.program_id(2) == pl.num_programs(2) - 1)
    def _():
        y = acc_ref[...] + b_ref[...]
        yn = _ln_rows(y, g_ref[...], bln_ref[...], eps)
        o_ref[...] = (res_ref[...].astype(jnp.float32) + yn).astype(o_ref.dtype)


def linear_add_layernorm(x, w, b, residual, ln_g, ln_b, eps):
    m, k = x.shape
    n = w.shape[1]
    tm = _pick_tile(m, (512, 256, 128, 64, 32, 16, 8))
    tn = n                                  # full row resident -> LN over last axis is exact
    tk = _pick_tile(k, (1024, 512, 256, 128))
    grid = (m // tm, 1, k // tk)
    return pl.pallas_call(
        functools.partial(_linear_res_ln_kernel, eps=eps, mxu_dtype=MXU_DTYPE),
        grid=grid,
        in_specs=[
            pl.BlockSpec((tm, tk), lambda i, j, kk: (i, kk)),
            pl.BlockSpec((tk, tn), lambda i, j, kk: (kk, j)),
            pl.BlockSpec((1, tn), lambda i, j, kk: (0, j)),
            pl.BlockSpec((tm, tn), lambda i, j, kk: (i, j)),
            pl.BlockSpec((1, tn), lambda i, j, kk: (0, j)),
            pl.BlockSpec((1, tn), lambda i, j, kk: (0, j)),
        ],
        out_specs=pl.BlockSpec((tm, tn), lambda i, j, kk: (i, j)),
        out_shape=jax.ShapeDtypeStruct((m, n), ACT_DTYPE),
        scratch_shapes=[pltpu.VMEM((tm, tn), jnp.float32)],
        input_output_aliases={3: 0},        # residual buffer reused for the output
        compiler_params=pltpu.CompilerParams(
            dimension_semantics=("parallel", "parallel", "arbitrary"),
            vmem_limit_bytes=_VMEM_LIMIT,
        ),
    )(x, w, b.reshape(1, n), residual, ln_g.reshape(1, n), ln_b.reshape(1, n))


# ----------------------------- layernorm (row-tiled) -----------------------------

def _layernorm_kernel(x_ref, g_ref, b_ref, o_ref, *, eps):
    o_ref[...] = _ln_rows(x_ref[...], g_ref[...], b_ref[...], eps).astype(o_ref.dtype)


def layernorm(x, g, b, eps):
    m, d = x.shape
    tm = _pick_tile(m, (1024, 512, 256, 128, 64, 32, 16, 8))
    return pl.pallas_call(
        functools.partial(_layernorm_kernel, eps=eps),
        grid=(m // tm,),
        in_specs=[
            pl.BlockSpec((tm, d), lambda i: (i, 0)),
            pl.BlockSpec((1, d), lambda i: (0, 0)),
            pl.BlockSpec((1, d), lambda i: (0, 0)),
        ],
        out_specs=pl.BlockSpec((tm, d), lambda i: (i, 0)),
        out_shape=jax.ShapeDtypeStruct((m, d), ACT_DTYPE),
        compiler_params=pltpu.CompilerParams(
            dimension_semantics=("parallel",),
            vmem_limit_bytes=_VMEM_LIMIT,
        ),
    )(x, g.reshape(1, d), b.reshape(1, d))


# ----------------------------- attention (grid over batch x heads, flash KV tiling) -----------------------------

def _attn_kernel(q_ref, k_ref, v_ref, qg_ref, qb_ref, kg_ref, kb_ref, o_ref,
                 qn_sc, m_sc, l_sc, acc_sc, *, scale, qk_eps, mxu_dtype):
    kv = pl.program_id(2)

    @pl.when(kv == 0)
    def _():
        # q_norm then scale (matches PyTorch: q = q_norm(q); q = q * scale)
        qn_sc[...] = _ln_rows(q_ref[0, 0, 0], qg_ref[...], qb_ref[...], qk_eps) * scale
        m_sc[...] = jnp.full_like(m_sc, -jnp.inf)
        l_sc[...] = jnp.zeros_like(l_sc)
        acc_sc[...] = jnp.zeros_like(acc_sc)

    k = _ln_rows(k_ref[0, 0, 0], kg_ref[...], kb_ref[...], qk_eps)          # k_norm
    s = jax.lax.dot_general(
        qn_sc[...].astype(mxu_dtype), k.astype(mxu_dtype),
        (((1,), (1,)), ((), ())), preferred_element_type=jnp.float32)        # (N, tkv)

    m_prev = m_sc[...]
    m_new = jnp.maximum(m_prev, jnp.max(s, axis=-1, keepdims=True))
    alpha = jnp.exp(m_prev - m_new)
    p = jnp.exp(s - m_new)
    l_sc[...] = alpha * l_sc[...] + jnp.sum(p, axis=-1, keepdims=True)
    acc_sc[...] = alpha * acc_sc[...] + jnp.dot(
        p.astype(mxu_dtype), v_ref[0, 0, 0].astype(mxu_dtype),
        preferred_element_type=jnp.float32)
    m_sc[...] = m_new

    @pl.when(kv == pl.num_programs(2) - 1)
    def _():
        o_ref[0, 0] = (acc_sc[...] *
                       pl.reciprocal(l_sc[...], approx=True)).astype(o_ref.dtype)


def attention(qkv_flat, qn_g, qn_b, kn_g, kn_b, *, batch, tokens, num_heads, head_dim, scale):
    d = num_heads * head_dim
    # (B*N, 3D) -> (3, B, H, N, hd)  (same permutation as the PyTorch reference)
    qkv5 = qkv_flat.reshape(batch, tokens, 3, num_heads, head_dim).transpose(2, 0, 3, 1, 4)
    tkv = _pick_tile(tokens, (1024, 512, 256, 128))
    nkv = tokens // tkv
    hd_spec = pl.BlockSpec((1, head_dim), lambda b, h, kvi: (0, 0))
    out = pl.pallas_call(
        functools.partial(_attn_kernel, scale=scale, qk_eps=1e-5, mxu_dtype=MXU_DTYPE),
        grid=(batch, num_heads, nkv),
        in_specs=[
            pl.BlockSpec((1, 1, 1, tokens, head_dim), lambda b, h, kvi: (0, b, h, 0, 0)),
            pl.BlockSpec((1, 1, 1, tkv, head_dim), lambda b, h, kvi: (1, b, h, kvi, 0)),
            pl.BlockSpec((1, 1, 1, tkv, head_dim), lambda b, h, kvi: (2, b, h, kvi, 0)),
            hd_spec, hd_spec, hd_spec, hd_spec,
        ],
        out_specs=pl.BlockSpec((1, 1, tokens, head_dim), lambda b, h, kvi: (b, h, 0, 0)),
        out_shape=jax.ShapeDtypeStruct((batch, num_heads, tokens, head_dim), ACT_DTYPE),
        scratch_shapes=[
            pltpu.VMEM((tokens, head_dim), jnp.float32),   # normed+scaled q
            pltpu.VMEM((tokens, 1), jnp.float32),          # running max
            pltpu.VMEM((tokens, 1), jnp.float32),          # running denom
            pltpu.VMEM((tokens, head_dim), jnp.float32),   # output accumulator
        ],
        compiler_params=pltpu.CompilerParams(
            dimension_semantics=("parallel", "parallel", "arbitrary"),
            vmem_limit_bytes=_VMEM_LIMIT,
        ),
    )(qkv5, qkv5, qkv5,
      qn_g.reshape(1, head_dim), qn_b.reshape(1, head_dim),
      kn_g.reshape(1, head_dim), kn_b.reshape(1, head_dim))
    # (B, H, N, hd) -> (B*N, D) for the projection GEMM
    return out.transpose(0, 2, 1, 3).reshape(batch * tokens, d)


# ----------------------------- fused final-norm + avg-pool + classifier head -----------------------------

def _pool_head_kernel(x_ref, g_ref, b_ref, w_ref, hb_ref, o_ref, pool_sc, *, eps):
    bidx = pl.program_id(0)
    xn = _ln_rows(x_ref[0], g_ref[...], b_ref[...], eps)                 # (N, D) final LN
    pool_sc[pl.ds(bidx, 1), :] = jnp.mean(xn, axis=0, keepdims=True)     # (1, D) avg pool

    @pl.when(bidx == pl.num_programs(0) - 1)
    def _():
        # one batched (B, D) x (D, n_cls) head matmul instead of B matmuls at M=1
        o_ref[...] = jnp.dot(pool_sc[...], w_ref[...],
                             preferred_element_type=jnp.float32) + hb_ref[...]


def pool_head(x, norm_g, norm_b, head_w, head_b, eps):
    bsz, n, d = x.shape
    n_cls = head_w.shape[1]
    return pl.pallas_call(
        functools.partial(_pool_head_kernel, eps=eps),
        grid=(bsz,),
        in_specs=[
            pl.BlockSpec((1, n, d), lambda i: (i, 0, 0)),
            pl.BlockSpec((1, d), lambda i: (0, 0)),
            pl.BlockSpec((1, d), lambda i: (0, 0)),
            pl.BlockSpec((d, n_cls), lambda i: (0, 0)),
            pl.BlockSpec((1, n_cls), lambda i: (0, 0)),
        ],
        out_specs=pl.BlockSpec((bsz, n_cls), lambda i: (0, 0)),          # resident across grid
        out_shape=jax.ShapeDtypeStruct((bsz, n_cls), jnp.float32),
        scratch_shapes=[pltpu.VMEM((bsz, d), jnp.float32)],
        compiler_params=pltpu.CompilerParams(
            dimension_semantics=("arbitrary",),
            vmem_limit_bytes=_VMEM_LIMIT,
        ),
    )(x, norm_g.reshape(1, d), norm_b.reshape(1, d), head_w, head_b.reshape(1, n_cls))


# ----------------------------- parameter init -----------------------------

def _linear_init(key, fan_in, fan_out):
    # mimics torch.nn.Linear default init (uniform(-1/sqrt(fan_in), 1/sqrt(fan_in)))
    kw, kb = jax.random.split(key)
    bound = 1.0 / (fan_in ** 0.5)
    w = jax.random.uniform(kw, (fan_in, fan_out), jnp.float32, -bound, bound)
    b = jax.random.uniform(kb, (fan_out,), jnp.float32, -bound, bound)
    return w, b


def init_params(key, *, patch_size, in_chans, embed_dim, depth, num_heads,
                mlp_ratio, num_classes, init_values):
    patch_dim = in_chans * patch_size * patch_size
    hidden = int(embed_dim * mlp_ratio)
    head_dim = embed_dim // num_heads
    p = {}

    key, k0 = jax.random.split(key)
    # DualPatchNormEmbedding: LayerNorm(patch_dim) -> Linear -> LayerNorm(embed_dim)
    p["pe_proj_w"], p["pe_proj_b"] = _linear_init(k0, patch_dim, embed_dim)
    p["pe_n0_g"] = jnp.ones((patch_dim,), jnp.float32)
    p["pe_n0_b"] = jnp.zeros((patch_dim,), jnp.float32)
    p["pe_n1_g"] = jnp.ones((embed_dim,), jnp.float32)
    p["pe_n1_b"] = jnp.zeros((embed_dim,), jnp.float32)

    blocks = []
    for _ in range(depth):
        key, k1, k2, k3, k4 = jax.random.split(key, 5)
        bp = {}
        bp["qkv_w"], bp["qkv_b"] = _linear_init(k1, embed_dim, 3 * embed_dim)  # qkv_bias=True
        bp["proj_w"], bp["proj_b"] = _linear_init(k2, embed_dim, embed_dim)
        bp["fc1_w"], bp["fc1_b"] = _linear_init(k3, embed_dim, hidden)
        bp["fc2_w"], bp["fc2_b"] = _linear_init(k4, hidden, embed_dim)
        bp["qn_g"] = jnp.ones((head_dim,), jnp.float32)
        bp["qn_b"] = jnp.zeros((head_dim,), jnp.float32)
        bp["kn_g"] = jnp.ones((head_dim,), jnp.float32)
        bp["kn_b"] = jnp.zeros((head_dim,), jnp.float32)
        # ResPost block: norm1/norm2 gains set to init_values (layer-scale via norm weight)
        bp["n1_g"] = jnp.full((embed_dim,), init_values, jnp.float32)
        bp["n1_b"] = jnp.zeros((embed_dim,), jnp.float32)
        bp["n2_g"] = jnp.full((embed_dim,), init_values, jnp.float32)
        bp["n2_b"] = jnp.zeros((embed_dim,), jnp.float32)
        blocks.append(bp)
    p["blocks"] = blocks

    p["norm_g"] = jnp.ones((embed_dim,), jnp.float32)
    p["norm_b"] = jnp.zeros((embed_dim,), jnp.float32)

    key, kh = jax.random.split(key)
    p["head_w"], p["head_b"] = _linear_init(kh, embed_dim, num_classes)
    return p


# ----------------------------- model forward -----------------------------

def block_forward(bp, x_flat, *, batch, tokens, num_heads):
    # ResPostRelPosBlock:  x = x + norm1(attn(x));  x = x + norm2(mlp(x))
    d = x_flat.shape[1]
    head_dim = d // num_heads
    scale = head_dim ** (-0.5)

    qkv = linear(x_flat, bp["qkv_w"], bp["qkv_b"])                       # (B*N, 3D)
    o = attention(qkv, bp["qn_g"], bp["qn_b"], bp["kn_g"], bp["kn_b"],
                  batch=batch, tokens=tokens, num_heads=num_heads,
                  head_dim=head_dim, scale=scale)                        # (B*N, D)
    # proj + norm1 + residual fused (eps=1e-6)
    x_flat = linear_add_layernorm(o, bp["proj_w"], bp["proj_b"],
                                  x_flat, bp["n1_g"], bp["n1_b"], 1e-6)

    h = linear(x_flat, bp["fc1_w"], bp["fc1_b"], activation="gelu")      # fc1 + exact GELU
    # fc2 + norm2 + residual fused (eps=1e-6)
    x_flat = linear_add_layernorm(h, bp["fc2_w"], bp["fc2_b"],
                                  x_flat, bp["n2_g"], bp["n2_b"], 1e-6)
    return x_flat


def vit_relpos_forward(params, x, *, patch_size, embed_dim, num_heads, depth):
    # x is NCHW (B, C, H, W); tokens are (B*N, D) slabs, N = (H/P)*(W/P),
    # patch pixel ordering inside a token is (c, p1, p2).
    B, C, H, W = x.shape
    P = patch_size
    gh, gw = H // P, W // P
    N = gh * gw

    # patchify (plain-JAX glue under jit)
    xp = x.reshape(B, C, gh, P, gw, P).transpose(0, 2, 4, 1, 3, 5)
    xp = xp.reshape(B * N, C * P * P)

    # DualPatchNorm patch embedding: LN -> Linear -> LN
    t = layernorm(xp, params["pe_n0_g"], params["pe_n0_b"], 1e-6)
    t = linear(t, params["pe_proj_w"], params["pe_proj_b"])
    t = layernorm(t, params["pe_n1_g"], params["pe_n1_b"], 1e-6)

    # transformer blocks (tokens stay flattened as (B*N, D))
    for i in range(depth):
        t = block_forward(params["blocks"][i], t, batch=B, tokens=N, num_heads=num_heads)

    # fused: final norm (eps=1e-6) + global-avg pool + classifier head
    logits = pool_head(t.reshape(B, N, embed_dim),
                       params["norm_g"], params["norm_b"],
                       params["head_w"], params["head_b"], 1e-6)
    return logits


# ----------------------------- main -----------------------------

if __name__ == "__main__":
    cfg = dict(
        patch_size=8,
        in_chans=3,
        embed_dim=64,
        depth=2,
        num_heads=4,
        mlp_ratio=4.0,
        num_classes=3,
        init_values=1e-6,
    )
    B, C, H, W = 2, 3, 16, 16

    key = jax.random.PRNGKey(0)
    pkey, xkey = jax.random.split(key)
    params = init_params(
        pkey,
        patch_size=cfg["patch_size"],
        in_chans=cfg["in_chans"],
        embed_dim=cfg["embed_dim"],
        depth=cfg["depth"],
        num_heads=cfg["num_heads"],
        mlp_ratio=cfg["mlp_ratio"],
        num_classes=cfg["num_classes"],
        init_values=cfg["init_values"],
    )
    x = jax.random.normal(xkey, (B, C, H, W), jnp.float32)

    fwd = jax.jit(functools.partial(
        vit_relpos_forward,
        patch_size=cfg["patch_size"],
        embed_dim=cfg["embed_dim"],
        num_heads=cfg["num_heads"],
        depth=cfg["depth"],
    ))
    out = jax.block_until_ready(fwd(params, x))
    assert out.shape == (B, cfg["num_classes"]), out.shape
    assert bool(jnp.all(jnp.isfinite(out)))
    print("KERNEL_OK")
</pallas_src>

<mosaic_0001>
module attributes {stable_mosaic.version = 11 : i64} {
  func.func @_layernorm_kernel(%arg0: i32, %arg1: memref<8x192xf32, #tpu.memory_space<vmem>>, %arg2: memref<1x192xf32, #tpu.memory_space<vmem>>, %arg3: memref<1x192xf32, #tpu.memory_space<vmem>>, %arg4: memref<8x192xbf16, #tpu.memory_space<vmem>>) attributes {dimension_semantics = [#tpu.dimension_semantics<parallel>], iteration_bounds = array<i64: 1>, scalar_prefetch = 0 : i64, scratch_operands = 0 : i64, tpu.core_type = #tpu.core_type<tc>, window_params = [{transform_indices = @transform_0, window_bounds = array<i64: 8, 192>}, {pipeline_mode = #tpu.pipeline_mode<synchronous>, transform_indices = @transform_1, window_bounds = array<i64: 1, 192>}, {pipeline_mode = #tpu.pipeline_mode<synchronous>, transform_indices = @transform_2, window_bounds = array<i64: 1, 192>}, {transform_indices = @transform_3, window_bounds = array<i64: 8, 192>}]} {
    %c0 = arith.constant 0 : index
    %c0_0 = arith.constant 0 : index
    %0 = vector.load %arg1[%c0, %c0_0] : memref<8x192xf32, #tpu.memory_space<vmem>>, vector<8x192xf32>
    %c0_1 = arith.constant 0 : index
    %c0_2 = arith.constant 0 : index
    %1 = vector.load %arg2[%c0_1, %c0_2] : memref<1x192xf32, #tpu.memory_space<vmem>>, vector<1x192xf32>
    %c0_3 = arith.constant 0 : index
    %c0_4 = arith.constant 0 : index
    %2 = vector.load %arg3[%c0_3, %c0_4] : memref<1x192xf32, #tpu.memory_space<vmem>>, vector<1x192xf32>
    %cst = arith.constant dense<0.000000e+00> : vector<8xf32>
    %3 = vector.multi_reduction <add>, %0, %cst [1] : vector<8x192xf32> to vector<8xf32>
    %4 = vector.shape_cast %3 : vector<8xf32> to vector<8x1xf32>
    %cst_5 = arith.constant 1.920000e+02 : f32
    %5 = vector.broadcast %cst_5 : f32 to vector<8x1xf32>
    %6 = arith.divf %4, %5 : vector<8x1xf32>
    %7 = vector.broadcast %6 : vector<8x1xf32> to vector<8x192xf32>
    %8 = arith.subf %0, %7 : vector<8x192xf32>
    %9 = arith.mulf %8, %8 : vector<8x192xf32>
    %cst_6 = arith.constant dense<0.000000e+00> : vector<8xf32>
    %10 = vector.multi_reduction <add>, %9, %cst_6 [1] : vector<8x192xf32> to vector<8xf32>
    %11 = vector.shape_cast %10 : vector<8xf32> to vector<8x1xf32>
    %cst_7 = arith.constant 1.920000e+02 : f32
    %12 = vector.broadcast %cst_7 : f32 to vector<8x1xf32>
    %13 = arith.divf %11, %12 : vector<8x1xf32>
    %cst_8 = arith.constant 9.99999997E-7 : f32
    %14 = vector.broadcast %cst_8 : f32 to vector<8x1xf32>
    %15 = arith.addf %13, %14 : vector<8x1xf32>
    %16 = math.rsqrt %15 : vector<8x1xf32>
    %17 = vector.broadcast %16 : vector<8x1xf32> to vector<8x192xf32>
    %18 = arith.mulf %8, %17 : vector<8x192xf32>
    %19 = vector.broadcast %1 : vector<1x192xf32> to vector<8x192xf32>
    %20 = arith.mulf %18, %19 : vector<8x192xf32>
    %21 = vector.broadcast %2 : vector<1x192xf32> to vector<8x192xf32>
    %22 = arith.addf %20, %21 : vector<8x192xf32>
    %23 = arith.truncf %22 : vector<8x192xf32> to vector<8x192xbf16>
    %c0_9 = arith.constant 0 : index
    %c0_10 = arith.constant 0 : index
    %24 = vector.load %arg4[%c0_9, %c0_10] : memref<8x192xbf16, #tpu.memory_space<vmem>>, vector<8x192xbf16>
    tpu.vector_store %arg4[%c0_9, %c0_10], %23 {strides = array<i32>} : memref<8x192xbf16, #tpu.memory_space<vmem>>, vector<8x192xbf16>,
    return
  }
  func.func @transform_0(%arg0: i32) -> (i32, i32) {
    %c0_i32 = arith.constant 0 : i32
    %c0_i32_0 = arith.constant 0 : i32
    return %arg0, %c0_i32 : i32, i32
  }
  func.func @transform_1(%arg0: i32) -> (i32, i32) {
    %c0_i32 = arith.constant 0 : i32
    %c0_i32_0 = arith.constant 0 : i32
    %c0_i32_1 = arith.constant 0 : i32
    return %c0_i32, %c0_i32_0 : i32, i32
  }
  func.func @transform_2(%arg0: i32) -> (i32, i32) {
    %c0_i32 = arith.constant 0 : i32
    %c0_i32_0 = arith.constant 0 : i32
    %c0_i32_1 = arith.constant 0 : i32
    return %c0_i32, %c0_i32_0 : i32, i32
  }
  func.func @transform_3(%arg0: i32) -> (i32, i32) {
    %c0_i32 = arith.constant 0 : i32
    %c0_i32_0 = arith.constant 0 : i32
    return %arg0, %c0_i32 : i32, i32
  }
}

module attributes {stable_mosaic.version = 11 : i64} {
  func.func @_layernorm_kernel(%arg0: i32, %arg1: memref<8x64xbf16, #tpu.memory_space<vmem>>, %arg2: memref<1x64xf32, #tpu.memory_space<vmem>>, %arg3: memref<1x64xf32, #tpu.memory_space<vmem>>, %arg4: memref<8x64xbf16, #tpu.memory_space<vmem>>) attributes {dimension_semantics = [#tpu.dimension_semantics<parallel>], iteration_bounds = array<i64: 1>, scalar_prefetch = 0 : i64, scratch_operands = 0 : i64, tpu.core_type = #tpu.core_type<tc>, window_params = [{transform_indices = @transform_0, window_bounds = array<i64: 8, 64>}, {pipeline_mode = #tpu.pipeline_mode<synchronous>, transform_indices = @transform_1, window_bounds = array<i64: 1, 64>}, {pipeline_mode = #tpu.pipeline_mode<synchronous>, transform_indices = @transform_2, window_bounds = array<i64: 1, 64>}, {transform_indices = @transform_3, window_bounds = array<i64: 8, 64>}]} {
    %c0 = arith.constant 0 : index
    %c0_0 = arith.constant 0 : index
    %0 = vector.load %arg1[%c0, %c0_0] : memref<8x64xbf16, #tpu.memory_space<vmem>>, vector<8x64xbf16>
    %c0_1 = arith.constant 0 : index
    %c0_2 = arith.constant 0 : index
    %1 = vector.load %arg2[%c0_1, %c0_2] : memref<1x64xf32, #tpu.memory_space<vmem>>, vector<1x64xf32>
    %c0_3 = arith.constant 0 : index
    %c0_4 = arith.constant 0 : index
    %2 = vector.load %arg3[%c0_3, %c0_4] : memref<1x64xf32, #tpu.memory_space<vmem>>, vector<1x64xf32>
    %3 = arith.extf %0 : vector<8x64xbf16> to vector<8x64xf32>
    %cst = arith.constant dense<0.000000e+00> : vector<8xf32>
    %4 = vector.multi_reduction <add>, %3, %cst [1] : vector<8x64xf32> to vector<8xf32>
    %5 = vector.shape_cast %4 : vector<8xf32> to vector<8x1xf32>
    %cst_5 = arith.constant 6.400000e+01 : f32
    %6 = vector.broadcast %cst_5 : f32 to vector<8x1xf32>
    %7 = arith.divf %5, %6 : vector<8x1xf32>
    %8 = vector.broadcast %7 : vector<8x1xf32> to vector<8x64xf32>
    %9 = arith.subf %3, %8 : vector<8x64xf32>
    %10 = arith.mulf %9, %9 : vector<8x64xf32>
    %cst_6 = arith.constant dense<0.000000e+00> : vector<8xf32>
    %11 = vector.multi_reduction <add>, %10, %cst_6 [1] : vector<8x64xf32> to vector<8xf32>
    %12 = vector.shape_cast %11 : vector<8xf32> to vector<8x1xf32>
    %cst_7 = arith.constant 6.400000e+01 : f32
    %13 = vector.broadcast %cst_7 : f32 to vector<8x1xf32>
    %14 = arith.divf %12, %13 : vector<8x1xf32>
    %cst_8 = arith.constant 9.99999997E-7 : f32
    %15 = vector.broadcast %cst_8 : f32 to vector<8x1xf32>
    %16 = arith.addf %14, %15 : vector<8x1xf32>
    %17 = math.rsqrt %16 : vector<8x1xf32>
    %18 = vector.broadcast %17 : vector<8x1xf32> to vector<8x64xf32>
    %19 = arith.mulf %9, %18 : vector<8x64xf32>
    %20 = vector.broadcast %1 : vector<1x64xf32> to vector<8x64xf32>
    %21 = arith.mulf %19, %20 : vector<8x64xf32>
    %22 = vector.broadcast %2 : vector<1x64xf32> to vector<8x64xf32>
    %23 = arith.addf %21, %22 : vector<8x64xf32>
    %24 = arith.truncf %23 : vector<8x64xf32> to vector<8x64xbf16>
    %c0_9 = arith.constant 0 : index
    %c0_10 = arith.constant 0 : index
    %25 = vector.load %arg4[%c0_9, %c0_10] : memref<8x64xbf16, #tpu.memory_space<vmem>>, vector<8x64xbf16>
    tpu.vector_store %arg4[%c0_9, %c0_10], %24 {strides = array<i32>} : memref<8x64xbf16, #tpu.memory_space<vmem>>, vector<8x64xbf16>,
    return
  }
  func.func @transform_0(%arg0: i32) -> (i32, i32) {
    %c0_i32 = arith.constant 0 : i32
    %c0_i32_0 = arith.constant 0 : i32
    return %arg0, %c0_i32 : i32, i32
  }
  func.func @transform_1(%arg0: i32) -> (i32, i32) {
    %c0_i32 = arith.constant 0 : i32
    %c0_i32_0 = arith.constant 0 : i32
    %c0_i32_1 = arith.constant 0 : i32
    return %c0_i32, %c0_i32_0 : i32, i32
  }
  func.func @transform_2(%arg0: i32) -> (i32, i32) {
    %c0_i32 = arith.constant 0 : i32
    %c0_i32_0 = arith.constant 0 : i32
    %c0_i32_1 = arith.constant 0 : i32
    return %c0_i32, %c0_i32_0 : i32, i32
  }
  func.func @transform_3(%arg0: i32) -> (i32, i32) {
    %c0_i32 = arith.constant 0 : i32
    %c0_i32_0 = arith.constant 0 : i32
    return %arg0, %c0_i32 : i32, i32
  }
}

module attributes {stable_mosaic.version = 11 : i64} {
  func.func @_linear_kernel(%arg0: i32, %arg1: i32, %arg2: i32, %arg3: memref<8x192xbf16, #tpu.memory_space<vmem>>, %arg4: memref<192x64xf32, #tpu.memory_space<vmem>>, %arg5: memref<1x64xf32, #tpu.memory_space<vmem>>, %arg6: memref<8x64xbf16, #tpu.memory_space<vmem>>, %arg7: memref<8x64xf32, #tpu.memory_space<vmem>>) attributes {dimension_semantics = [#tpu.dimension_semantics<parallel>, #tpu.dimension_semantics<parallel>, #tpu.dimension_semantics<arbitrary>], iteration_bounds = array<i64: 1, 1, 1>, scalar_prefetch = 0 : i64, scratch_operands = 1 : i64, tpu.core_type = #tpu.core_type<tc>, window_params = [{transform_indices = @transform_0, window_bounds = array<i64: 8, 192>}, {transform_indices = @transform_1, window_bounds = array<i64: 192, 64>}, {transform_indices = @transform_2, window_bounds = array<i64: 1, 64>}, {transform_indices = @transform_3, window_bounds = array<i64: 8, 64>}]} {
    %c0_i32 = arith.constant 0 : i32
    %0 = arith.cmpi eq, %arg2, %c0_i32 : i32
    %1 = arith.extui %0 : i1 to i32
    %c0_i32_0 = arith.constant 0 : i32
    %2 = arith.cmpi ne, %1, %c0_i32_0 : i32
    scf.if %2 {
      %cst_10 = arith.constant 0.000000e+00 : f32
      %13 = vector.broadcast %cst_10 : f32 to vector<8x64xf32>
      %c0_11 = arith.constant 0 : index
      %c0_12 = arith.constant 0 : index
      %14 = vector.load %arg7[%c0_11, %c0_12] : memref<8x64xf32, #tpu.memory_space<vmem>>, vector<8x64xf32>
      tpu.vector_store %arg7[%c0_11, %c0_12], %13 {strides = array<i32>} : memref<8x64xf32, #tpu.memory_space<vmem>>, vector<8x64xf32>,
    } else {
    }
    %c0 = arith.constant 0 : index
    %c0_1 = arith.constant 0 : index
    %3 = vector.load %arg7[%c0, %c0_1] : memref<8x64xf32, #tpu.memory_space<vmem>>, vector<8x64xf32>
    %c0_2 = arith.constant 0 : index
    %c0_3 = arith.constant 0 : index
    %4 = vector.load %arg3[%c0_2, %c0_3] : memref<8x192xbf16, #tpu.memory_space<vmem>>, vector<8x192xbf16>
    %c0_4 = arith.constant 0 : index
    %c0_5 = arith.constant 0 : index
    %5 = vector.load %arg4[%c0_4, %c0_5] : memref<192x64xf32, #tpu.memory_space<vmem>>, vector<192x64xf32>
    %6 = arith.truncf %5 : vector<192x64xf32> to vector<192x64xbf16>
    %cst = arith.constant dense<0.000000e+00> : vector<8x64xf32>
    %7 = tpu.matmul %4, %6, %cst {dimension_numbers = #tpu.dot_dimension_numbers<[1], [0], [0], [1], [0, 0, 1, 1], [], []>} : vector<8x192xbf16>, vector<192x64xbf16>, vector<8x64xf32> -> vector<8x64xf32>
    %8 = arith.addf %3, %7 : vector<8x64xf32>
    %c0_6 = arith.constant 0 : index
    %c0_7 = arith.constant 0 : index
    %9 = vector.load %arg7[%c0_6, %c0_7] : memref<8x64xf32, #tpu.memory_space<vmem>>, vector<8x64xf32>
    tpu.vector_store %arg7[%c0_6, %c0_7], %8 {strides = array<i32>} : memref<8x64xf32, #tpu.memory_space<vmem>>, vector<8x64xf32>,
    %c0_i32_8 = arith.constant 0 : i32
    %10 = arith.cmpi eq, %arg2, %c0_i32_8 : i32
    %11 = arith.extui %10 : i1 to i32
    %c0_i32_9 = arith.constant 0 : i32
    %12 = arith.cmpi ne, %11, %c0_i32_9 : i32
    scf.if %12 {
      %c0_10 = arith.constant 0 : index
      %c0_11 = arith.constant 0 : index
      %13 = vector.load %arg7[%c0_10, %c0_11] : memref<8x64xf32, #tpu.memory_space<vmem>>, vector<8x64xf32>
      %c0_12 = arith.constant 0 : index
      %c0_13 = arith.constant 0 : index
      %14 = vector.load %arg5[%c0_12, %c0_13] : memref<1x64xf32, #tpu.memory_space<vmem>>, vector<1x64xf32>
      %15 = vector.broadcast %14 : vector<1x64xf32> to vector<8x64xf32>
      %16 = arith.addf %13, %15 : vector<8x64xf32>
      %17 = arith.truncf %16 : vector<8x64xf32> to vector<8x64xbf16>
      %c0_14 = arith.constant 0 : index
      %c0_15 = arith.constant 0 : index
      %18 = vector.load %arg6[%c0_14, %c0_15] : memref<8x64xbf16, #tpu.memory_space<vmem>>, vector<8x64xbf16>
      tpu.vector_store %arg6[%c0_14, %c0_15], %17 {strides = array<i32>} : memref<8x64xbf16, #tpu.memory_space<vmem>>, vector<8x64xbf16>,
    } else {
    }
    return
  }
  func.func @transform_0(%arg0: i32, %arg1: i32, %arg2: i32) -> (i32, i32) {
    %c0_i32 = arith.constant 0 : i32
    return %arg0, %arg2 : i32, i32
  }
  func.func @transform_1(%arg0: i32, %arg1: i32, %arg2: i32) -> (i32, i32) {
    %c0_i32 = arith.constant 0 : i32
    return %arg2, %arg1 : i32, i32
  }
  func.func @transform_2(%arg0: i32, %arg1: i32, %arg2: i32) -> (i32, i32) {
    %c0_i32 = arith.constant 0 : i32
    %c0_i32_0 = arith.constant 0 : i32
    return %c0_i32, %arg1 : i32, i32
  }
  func.func @transform_3(%arg0: i32, %arg1: i32, %arg2: i32) -> (i32, i32) {
    %c0_i32 = arith.constant 0 : i32
    return %arg0, %arg1 : i32, i32
  }
}

module attributes {stable_mosaic.version = 11 : i64} {
  func.func @_linear_kernel(%arg0: i32, %arg1: i32, %arg2: i32, %arg3: memref<8x64xbf16, #tpu.memory_space<vmem>>, %arg4: memref<64x192xf32, #tpu.memory_space<vmem>>, %arg5: memref<1x192xf32, #tpu.memory_space<vmem>>, %arg6: memref<8x192xbf16, #tpu.memory_space<vmem>>, %arg7: memref<8x192xf32, #tpu.memory_space<vmem>>) attributes {dimension_semantics = [#tpu.dimension_semantics<parallel>, #tpu.dimension_semantics<parallel>, #tpu.dimension_semantics<arbitrary>], iteration_bounds = array<i64: 1, 1, 1>, scalar_prefetch = 0 : i64, scratch_operands = 1 : i64, tpu.core_type = #tpu.core_type<tc>, window_params = [{transform_indices = @transform_0, window_bounds = array<i64: 8, 64>}, {transform_indices = @transform_1, window_bounds = array<i64: 64, 192>}, {transform_indices = @transform_2, window_bounds = array<i64: 1, 192>}, {transform_indices = @transform_3, window_bounds = array<i64: 8, 192>}]} {
    %c0_i32 = arith.constant 0 : i32
    %0 = arith.cmpi eq, %arg2, %c0_i32 : i32
    %1 = arith.extui %0 : i1 to i32
    %c0_i32_0 = arith.constant 0 : i32
    %2 = arith.cmpi ne, %1, %c0_i32_0 : i32
    scf.if %2 {
      %cst_10 = arith.constant 0.000000e+00 : f32
      %13 = vector.broadcast %cst_10 : f32 to vector<8x192xf32>
      %c0_11 = arith.constant 0 : index
      %c0_12 = arith.constant 0 : index
      %14 = vector.load %arg7[%c0_11, %c0_12] : memref<8x192xf32, #tpu.memory_space<vmem>>, vector<8x192xf32>
      tpu.vector_store %arg7[%c0_11, %c0_12], %13 {strides = array<i32>} : memref<8x192xf32, #tpu.memory_space<vmem>>, vector<8x192xf32>,
    } else {
    }
    %c0 = arith.constant 0 : index
    %c0_1 = arith.constant 0 : index
    %3 = vector.load %arg7[%c0, %c0_1] : memref<8x192xf32, #tpu.memory_space<vmem>>, vector<8x192xf32>
    %c0_2 = arith.constant 0 : index
    %c0_3 = arith.constant 0 : index
    %4 = vector.load %arg3[%c0_2, %c0_3] : memref<8x64xbf16, #tpu.memory_space<vmem>>, vector<8x64xbf16>
    %c0_4 = arith.constant 0 : index
    %c0_5 = arith.constant 0 : index
    %5 = vector.load %arg4[%c0_4, %c0_5] : memref<64x192xf32, #tpu.memory_space<vmem>>, vector<64x192xf32>
    %6 = arith.truncf %5 : vector<64x192xf32> to vector<64x192xbf16>
    %cst = arith.constant dense<0.000000e+00> : vector<8x192xf32>
    %7 = tpu.matmul %4, %6, %cst {dimension_numbers = #tpu.dot_dimension_numbers<[1], [0], [0], [1], [0, 0, 1, 1], [], []>} : vector<8x64xbf16>, vector<64x192xbf16>, vector<8x192xf32> -> vector<8x192xf32>
    %8 = arith.addf %3, %7 : vector<8x192xf32>
    %c0_6 = arith.constant 0 : index
    %c0_7 = arith.constant 0 : index
    %9 = vector.load %arg7[%c0_6, %c0_7] : memref<8x192xf32, #tpu.memory_space<vmem>>, vector<8x192xf32>
    tpu.vector_store %arg7[%c0_6, %c0_7], %8 {strides = array<i32>} : memref<8x192xf32, #tpu.memory_space<vmem>>, vector<8x192xf32>,
    %c0_i32_8 = arith.constant 0 : i32
    %10 = arith.cmpi eq, %arg2, %c0_i32_8 : i32
    %11 = arith.extui %10 : i1 to i32
    %c0_i32_9 = arith.constant 0 : i32
    %12 = arith.cmpi ne, %11, %c0_i32_9 : i32
    scf.if %12 {
      %c0_10 = arith.constant 0 : index
      %c0_11 = arith.constant 0 : index
      %13 = vector.load %arg7[%c0_10, %c0_11] : memref<8x192xf32, #tpu.memory_space<vmem>>, vector<8x192xf32>
      %c0_12 = arith.constant 0 : index
      %c0_13 = arith.constant 0 : index
      %14 = vector.load %arg5[%c0_12, %c0_13] : memref<1x192xf32, #tpu.memory_space<vmem>>, vector<1x192xf32>
      %15 = vector.broadcast %14 : vector<1x192xf32> to vector<8x192xf32>
      %16 = arith.addf %13, %15 : vector<8x192xf32>
      %17 = arith.truncf %16 : vector<8x192xf32> to vector<8x192xbf16>
      %c0_14 = arith.constant 0 : index
      %c0_15 = arith.constant 0 : index
      %18 = vector.load %arg6[%c0_14, %c0_15] : memref<8x192xbf16, #tpu.memory_space<vmem>>, vector<8x192xbf16>
      tpu.vector_store %arg6[%c0_14, %c0_15], %17 {strides = array<i32>} : memref<8x192xbf16, #tpu.memory_space<vmem>>, vector<8x192xbf16>,
    } else {
    }
    return
  }
  func.func @transform_0(%arg0: i32, %arg1: i32, %arg2: i32) -> (i32, i32) {
    %c0_i32 = arith.constant 0 : i32
    return %arg0, %arg2 : i32, i32
  }
  func.func @transform_1(%arg0: i32, %arg1: i32, %arg2: i32) -> (i32, i32) {
    %c0_i32 = arith.constant 0 : i32
    return %arg2, %arg1 : i32, i32
  }
  func.func @transform_2(%arg0: i32, %arg1: i32, %arg2: i32) -> (i32, i32) {
    %c0_i32 = arith.constant 0 : i32
    %c0_i32_0 = arith.constant 0 : i32
    return %c0_i32, %arg1 : i32, i32
  }
  func.func @transform_3(%arg0: i32, %arg1: i32, %arg2: i32) -> (i32, i32) {
    %c0_i32 = arith.constant 0 : i32
    return %arg0, %arg1 : i32, i32
  }
}

module attributes {stable_mosaic.version = 11 : i64} {
  func.func @_attn_kernel(%arg0: i32, %arg1: i32, %arg2: i32, %arg3: memref<1x1x1x4x16xbf16, #tpu.memory_space<vmem>>, %arg4: memref<1x1x1x4x16xbf16, #tpu.memory_space<vmem>>, %arg5: memref<1x1x1x4x16xbf16, #tpu.memory_space<vmem>>, %arg6: memref<1x16xf32, #tpu.memory_space<vmem>>, %arg7: memref<1x16xf32, #tpu.memory_space<vmem>>, %arg8: memref<1x16xf32, #tpu.memory_space<vmem>>, %arg9: memref<1x16xf32, #tpu.memory_space<vmem>>, %arg10: memref<1x1x4x16xbf16, #tpu.memory_space<vmem>>, %arg11: memref<4x16xf32, #tpu.memory_space<vmem>>, %arg12: memref<4x1xf32, #tpu.memory_space<vmem>>, %arg13: memref<4x1xf32, #tpu.memory_space<vmem>>, %arg14: memref<4x16xf32, #tpu.memory_space<vmem>>) attributes {dimension_semantics = [#tpu.dimension_semantics<parallel>, #tpu.dimension_semantics<parallel>, #tpu.dimension_semantics<arbitrary>], iteration_bounds = array<i64: 2, 4, 1>, scalar_prefetch = 0 : i64, scratch_operands = 4 : i64, tpu.core_type = #tpu.core_type<tc>, window_params = [{transform_indices = @transform_0, window_bounds = array<i64: 1, 1, 1, 4, 16>}, {transform_indices = @transform_1, window_bounds = array<i64: 1, 1, 1, 4, 16>}, {transform_indices = @transform_2, window_bounds = array<i64: 1, 1, 1, 4, 16>}, {pipeline_mode = #tpu.pipeline_mode<synchronous>, transform_indices = @transform_3, window_bounds = array<i64: 1, 16>}, {pipeline_mode = #tpu.pipeline_mode<synchronous>, transform_indices = @transform_4, window_bounds = array<i64: 1, 16>}, {pipeline_mode = #tpu.pipeline_mode<synchronous>, transform_indices = @transform_5, window_bounds = array<i64: 1, 16>}, {pipeline_mode = #tpu.pipeline_mode<synchronous>, transform_indices = @transform_6, window_bounds = array<i64: 1, 16>}, {transform_indices = @transform_7, window_bounds = array<i64: 1, 1, 4, 16>}]} {
    %c0_i32 = arith.constant 0 : i32
    %0 = arith.cmpi eq, %arg2, %c0_i32 : i32
    %1 = arith.extui %0 : i1 to i32
    %c0_i32_0 = arith.constant 0 : i32
    %2 = arith.cmpi ne, %1, %c0_i32_0 : i32
    scf.if %2 {
      %c0_38 = arith.constant 0 : index
      %c0_39 = arith.constant 0 : index
      %c0_40 = arith.constant 0 : index
      %c0_41 = arith.constant 0 : index
      %c0_42 = arith.constant 0 : index
      %60 = vector.load %arg3[%c0_38, %c0_39, %c0_40, %c0_41, %c0_42] : memref<1x1x1x4x16xbf16, #tpu.memory_space<vmem>>, vector<1x1x1x4x16xbf16>
      %61 = vector.shape_cast %60 : vector<1x1x1x4x16xbf16> to vector<4x16xbf16>
      %c0_43 = arith.constant 0 : index
      %c0_44 = arith.constant 0 : index
      %62 = vector.load %arg6[%c0_43, %c0_44] : memref<1x16xf32, #tpu.memory_space<vmem>>, vector<1x16xf32>
      %c0_45 = arith.constant 0 : index
      %c0_46 = arith.constant 0 : index
      %63 = vector.load %arg7[%c0_45, %c0_46] : memref<1x16xf32, #tpu.memory_space<vmem>>, vector<1x16xf32>
      %64 = arith.extf %61 : vector<4x16xbf16> to vector<4x16xf32>
      %cst_47 = arith.constant dense<0.000000e+00> : vector<4xf32>
      %65 = vector.multi_reduction <add>, %64, %cst_47 [1] : vector<4x16xf32> to vector<4xf32>
      %66 = vector.shape_cast %65 : vector<4xf32> to vector<4x1xf32>
      %cst_48 = arith.constant 1.600000e+01 : f32
      %67 = vector.broadcast %cst_48 : f32 to vector<4x1xf32>
      %68 = arith.divf %66, %67 : vector<4x1xf32>
      %69 = vector.broadcast %68 : vector<4x1xf32> to vector<4x16xf32>
      %70 = arith.subf %64, %69 : vector<4x16xf32>
      %71 = arith.mulf %70, %70 : vector<4x16xf32>
      %cst_49 = arith.constant dense<0.000000e+00> : vector<4xf32>
      %72 = vector.multi_reduction <add>, %71, %cst_49 [1] : vector<4x16xf32> to vector<4xf32>
      %73 = vector.shape_cast %72 : vector<4xf32> to vector<4x1xf32>
      %cst_50 = arith.constant 1.600000e+01 : f32
      %74 = vector.broadcast %cst_50 : f32 to vector<4x1xf32>
      %75 = arith.divf %73, %74 : vector<4x1xf32>
      %cst_51 = arith.constant 9.99999974E-6 : f32
      %76 = vector.broadcast %cst_51 : f32 to vector<4x1xf32>
      %77 = arith.addf %75, %76 : vector<4x1xf32>
      %78 = math.rsqrt %77 : vector<4x1xf32>
      %79 = vector.broadcast %78 : vector<4x1xf32> to vector<4x16xf32>
      %80 = arith.mulf %70, %79 : vector<4x16xf32>
      %81 = vector.broadcast %62 : vector<1x16xf32> to vector<4x16xf32>
      %82 = arith.mulf %80, %81 : vector<4x16xf32>
      %83 = vector.broadcast %63 : vector<1x16xf32> to vector<4x16xf32>
      %84 = arith.addf %82, %83 : vector<4x16xf32>
      %cst_52 = arith.constant 2.500000e-01 : f32
      %85 = vector.broadcast %cst_52 : f32 to vector<4x16xf32>
      %86 = arith.mulf %84, %85 : vector<4x16xf32>
      %c0_53 = arith.constant 0 : index
      %c0_54 = arith.constant 0 : index
      %87 = vector.load %arg11[%c0_53, %c0_54] : memref<4x16xf32, #tpu.memory_space<vmem>>, vector<4x16xf32>
      tpu.vector_store %arg11[%c0_53, %c0_54], %86 {strides = array<i32>} : memref<4x16xf32, #tpu.memory_space<vmem>>, vector<4x16xf32>,
      %cst_55 = arith.constant 0xFF800000 : f32
      %88 = vector.broadcast %cst_55 : f32 to vector<4x1xf32>
      %c0_56 = arith.constant 0 : index
      %c0_57 = arith.constant 0 : index
      %89 = vector.load %arg12[%c0_56, %c0_57] : memref<4x1xf32, #tpu.memory_space<vmem>>, vector<4x1xf32>
      tpu.vector_store %arg12[%c0_56, %c0_57], %88 {strides = array<i32>} : memref<4x1xf32, #tpu.memory_space<vmem>>, vector<4x1xf32>,
      %cst_58 = arith.constant 0.000000e+00 : f32
      %90 = vector.broadcast %cst_58 : f32 to vector<4x1xf32>
      %c0_59 = arith.constant 0 : index
      %c0_60 = arith.constant 0 : index
      %91 = vector.load %arg13[%c0_59, %c0_60] : memref<4x1xf32, #tpu.memory_space<vmem>>, vector<4x1xf32>
      tpu.vector_store %arg13[%c0_59, %c0_60], %90 {strides = array<i32>} : memref<4x1xf32, #tpu.memory_space<vmem>>, vector<4x1xf32>,
      %cst_61 = arith.constant 0.000000e+00 : f32
      %92 = vector.broadcast %cst_61 : f32 to vector<4x16xf32>
      %c0_62 = arith.constant 0 : index
      %c0_63 = arith.constant 0 : index
      %93 = vector.load %arg14[%c0_62, %c0_63] : memref<4x16xf32, #tpu.memory_space<vmem>>, vector<4x16xf32>
      tpu.vector_store %arg14[%c0_62, %c0_63], %92 {strides = array<i32>} : memref<4x16xf32, #tpu.memory_space<vmem>>, vector<4x16xf32>,
    } else {
    }
    %c0 = arith.constant 0 : index
    %c0_1 = arith.constant 0 : index
    %c0_2 = arith.constant 0 : index
    %c0_3 = arith.constant 0 : index
    %c0_4 = arith.constant 0 : index
    %3 = vector.load %arg4[%c0, %c0_1, %c0_2, %c0_3, %c0_4] : memref<1x1x1x4x16xbf16, #tpu.memory_space<vmem>>, vector<1x1x1x4x16xbf16>
    %4 = vector.shape_cast %3 : vector<1x1x1x4x16xbf16> to vector<4x16xbf16>
    %c0_5 = arith.constant 0 : index
    %c0_6 = arith.constant 0 : index
    %5 = vector.load %arg8[%c0_5, %c0_6] : memref<1x16xf32, #tpu.memory_space<vmem>>, vector<1x16xf32>
    %c0_7 = arith.constant 0 : index
    %c0_8 = arith.constant 0 : index
    %6 = vector.load %arg9[%c0_7, %c0_8] : memref<1x16xf32, #tpu.memory_space<vmem>>, vector<1x16xf32>
    %7 = arith.extf %4 : vector<4x16xbf16> to vector<4x16xf32>
    %cst = arith.constant dense<0.000000e+00> : vector<4xf32>
    %8 = vector.multi_reduction <add>, %7, %cst [1] : vector<4x16xf32> to vector<4xf32>
    %9 = vector.shape_cast %8 : vector<4xf32> to vector<4x1xf32>
    %cst_9 = arith.constant 1.600000e+01 : f32
    %10 = vector.broadcast %cst_9 : f32 to vector<4x1xf32>
    %11 = arith.divf %9, %10 : vector<4x1xf32>
    %12 = vector.broadcast %11 : vector<4x1xf32> to vector<4x16xf32>
    %13 = arith.subf %7, %12 : vector<4x16xf32>
    %14 = arith.mulf %13, %13 : vector<4x16xf32>
    %cst_10 = arith.constant dense<0.000000e+00> : vector<4xf32>
    %15 = vector.multi_reduction <add>, %14, %cst_10 [1] : vector<4x16xf32> to vector<4xf32>
    %16 = vector.shape_cast %15 : vector<4xf32> to vector<4x1xf32>
    %cst_11 = arith.constant 1.600000e+01 : f32
    %17 = vector.broadcast %cst_11 : f32 to vector<4x1xf32>
    %18 = arith.divf %16, %17 : vector<4x1xf32>
    %cst_12 = arith.constant 9.99999974E-6 : f32
    %19 = vector.broadcast %cst_12 : f32 to vector<4x1xf32>
    %20 = arith.addf %18, %19 : vector<4x1xf32>
    %21 = math.rsqrt %20 : vector<4x1xf32>
    %22 = vector.broadcast %21 : vector<4x1xf32> to vector<4x16xf32>
    %23 = arith.mulf %13, %22 : vector<4x16xf32>
    %24 = vector.broadcast %5 : vector<1x16xf32> to vector<4x16xf32>
    %25 = arith.mulf %23, %24 : vector<4x16xf32>
    %26 = vector.broadcast %6 : vector<1x16xf32> to vector<4x16xf32>
    %27 = arith.addf %25, %26 : vector<4x16xf32>
    %c0_13 = arith.constant 0 : index
    %c0_14 = arith.constant 0 : index
    %28 = vector.load %arg11[%c0_13, %c0_14] : memref<4x16xf32, #tpu.memory_space<vmem>>, vector<4x16xf32>
    %29 = arith.truncf %28 : vector<4x16xf32> to vector<4x16xbf16>
    %30 = arith.truncf %27 : vector<4x16xf32> to vector<4x16xbf16>
    %cst_15 = arith.constant dense<0.000000e+00> : vector<4x4xf32>
    %31 = tpu.matmul %29, %30, %cst_15 {dimension_numbers = #tpu.dot_dimension_numbers<[1], [1], [0], [0], [0, 0, 1, 0], [], []>} : vector<4x16xbf16>, vector<4x16xbf16>, vector<4x4xf32> -> vector<4x4xf32>
    %c0_16 = arith.constant 0 : index
    %c0_17 = arith.constant 0 : index
    %32 = vector.load %arg12[%c0_16, %c0_17] : memref<4x1xf32, #tpu.memory_space<vmem>>, vector<4x1xf32>
    %cst_18 = arith.constant dense<0xFF800000> : vector<4xf32>
    %33 = vector.multi_reduction <maximumf>, %31, %cst_18 [1] : vector<4x4xf32> to vector<4xf32>
    %34 = vector.shape_cast %33 : vector<4xf32> to vector<4x1xf32>
    %35 = arith.maximumf %32, %34 : vector<4x1xf32>
    %36 = arith.subf %32, %35 : vector<4x1xf32>
    %37 = math.exp %36 : vector<4x1xf32>
    %38 = vector.broadcast %35 : vector<4x1xf32> to vector<4x4xf32>
    %39 = arith.subf %31, %38 : vector<4x4xf32>
    %40 = math.exp %39 : vector<4x4xf32>
    %c0_19 = arith.constant 0 : index
    %c0_20 = arith.constant 0 : index
    %41 = vector.load %arg13[%c0_19, %c0_20] : memref<4x1xf32, #tpu.memory_space<vmem>>, vector<4x1xf32>
    %42 = arith.mulf %37, %41 : vector<4x1xf32>
    %cst_21 = arith.constant dense<0.000000e+00> : vector<4xf32>
    %43 = vector.multi_reduction <add>, %40, %cst_21 [1] : vector<4x4xf32> to vector<4xf32>
    %44 = vector.shape_cast %43 : vector<4xf32> to vector<4x1xf32>
    %45 = arith.addf %42, %44 : vector<4x1xf32>
    %c0_22 = arith.constant 0 : index
    %c0_23 = arith.constant 0 : index
    %46 = vector.load %arg13[%c0_22, %c0_23] : memref<4x1xf32, #tpu.memory_space<vmem>>, vector<4x1xf32>
    tpu.vector_store %arg13[%c0_22, %c0_23], %45 {strides = array<i32>} : memref<4x1xf32, #tpu.memory_space<vmem>>, vector<4x1xf32>,
    %c0_24 = arith.constant 0 : index
    %c0_25 = arith.constant 0 : index
    %47 = vector.load %arg14[%c0_24, %c0_25] : memref<4x16xf32, #tpu.memory_space<vmem>>, vector<4x16xf32>
    %48 = vector.broadcast %37 : vector<4x1xf32> to vector<4x16xf32>
    %49 = arith.mulf %48, %47 : vector<4x16xf32>
    %50 = arith.truncf %40 : vector<4x4xf32> to vector<4x4xbf16>
    %c0_26 = arith.constant 0 : index
    %c0_27 = arith.constant 0 : index
    %c0_28 = arith.constant 0 : index
    %c0_29 = arith.constant 0 : index
    %c0_30 = arith.constant 0 : index
    %51 = vector.load %arg5[%c0_26, %c0_27, %c0_28, %c0_29, %c0_30] : memref<1x1x1x4x16xbf16, #tpu.memory_space<vmem>>, vector<1x1x1x4x16xbf16>
    %52 = vector.shape_cast %51 : vector<1x1x1x4x16xbf16> to vector<4x16xbf16>
    %cst_31 = arith.constant dense<0.000000e+00> : vector<4x16xf32>
    %53 = tpu.matmul %50, %52, %cst_31 {dimension_numbers = #tpu.dot_dimension_numbers<[1], [0], [0], [1], [0, 0, 1, 1], [], []>} : vector<4x4xbf16>, vector<4x16xbf16>, vector<4x16xf32> -> vector<4x16xf32>
    %54 = arith.addf %49, %53 : vector<4x16xf32>
    %c0_32 = arith.constant 0 : index
    %c0_33 = arith.constant 0 : index
    %55 = vector.load %arg14[%c0_32, %c0_33] : memref<4x16xf32, #tpu.memory_space<vmem>>, vector<4x16xf32>
    tpu.vector_store %arg14[%c0_32, %c0_33], %54 {strides = array<i32>} : memref<4x16xf32, #tpu.memory_space<vmem>>, vector<4x16xf32>,
    %c0_34 = arith.constant 0 : index
    %c0_35 = arith.constant 0 : index
    %56 = vector.load %arg12[%c0_34, %c0_35] : memref<4x1xf32, #tpu.memory_space<vmem>>, vector<4x1xf32>
    tpu.vector_store %arg12[%c0_34, %c0_35], %35 {strides = array<i32>} : memref<4x1xf32, #tpu.memory_space<vmem>>, vector<4x1xf32>,
    %c0_i32_36 = arith.constant 0 : i32
    %57 = arith.cmpi eq, %arg2, %c0_i32_36 : i32
    %58 = arith.extui %57 : i1 to i32
    %c0_i32_37 = arith.constant 0 : i32
    %59 = arith.cmpi ne, %58, %c0_i32_37 : i32
    scf.if %59 {
      %c0_38 = arith.constant 0 : index
      %c0_39 = arith.constant 0 : index
      %60 = vector.load %arg14[%c0_38, %c0_39] : memref<4x16xf32, #tpu.memory_space<vmem>>, vector<4x16xf32>
      %c0_40 = arith.constant 0 : index
      %c0_41 = arith.constant 0 : index
      %61 = vector.load %arg13[%c0_40, %c0_41] : memref<4x1xf32, #tpu.memory_space<vmem>>, vector<4x1xf32>
      %62 = tpu.reciprocal %61 {approx = true} : vector<4x1xf32> -> vector<4x1xf32>
      %63 = vector.broadcast %62 : vector<4x1xf32> to vector<4x16xf32>
      %64 = arith.mulf %60, %63 : vector<4x16xf32>
      %65 = arith.truncf %64 : vector<4x16xf32> to vector<4x16xbf16>
      %c0_42 = arith.constant 0 : index
      %c0_43 = arith.constant 0 : index
      %c0_44 = arith.constant 0 : index
      %c0_45 = arith.constant 0 : index
      %66 = vector.load %arg10[%c0_42, %c0_43, %c0_44, %c0_45] : memref<1x1x4x16xbf16, #tpu.memory_space<vmem>>, vector<1x1x4x16xbf16>
      %67 = vector.shape_cast %66 : vector<1x1x4x16xbf16> to vector<4x16xbf16>
      %68 = vector.shape_cast %65 : vector<4x16xbf16> to vector<1x1x4x16xbf16>
      tpu.vector_store %arg10[%c0_42, %c0_43, %c0_44, %c0_45], %68 {strides = array<i32>} : memref<1x1x4x16xbf16, #tpu.memory_space<vmem>>, vector<1x1x4x16xbf16>,
    } else {
    }
    return
  }
  func.func @transform_0(%arg0: i32, %arg1: i32, %arg2: i32) -> (i32, i32, i32, i32, i32) {
    %c0_i32 = arith.constant 0 : i32
    %c0_i32_0 = arith.constant 0 : i32
    %c0_i32_1 = arith.constant 0 : i32
    %c0_i32_2 = arith.constant 0 : i32
    return %c0_i32, %arg0, %arg1, %c0_i32_0, %c0_i32_1 : i32, i32, i32, i32, i32
  }
  func.func @transform_1(%arg0: i32, %arg1: i32, %arg2: i32) -> (i32, i32, i32, i32, i32) {
    %c1_i32 = arith.constant 1 : i32
    %c0_i32 = arith.constant 0 : i32
    %c0_i32_0 = arith.constant 0 : i32
    return %c1_i32, %arg0, %arg1, %arg2, %c0_i32 : i32, i32, i32, i32, i32
  }
  func.func @transform_2(%arg0: i32, %arg1: i32, %arg2: i32) -> (i32, i32, i32, i32, i32) {
    %c2_i32 = arith.constant 2 : i32
    %c0_i32 = arith.constant 0 : i32
    %c0_i32_0 = arith.constant 0 : i32
    return %c2_i32, %arg0, %arg1, %arg2, %c0_i32 : i32, i32, i32, i32, i32
  }
  func.func @transform_3(%arg0: i32, %arg1: i32, %arg2: i32) -> (i32, i32) {
    %c0_i32 = arith.constant 0 : i32
    %c0_i32_0 = arith.constant 0 : i32
    %c0_i32_1 = arith.constant 0 : i32
    return %c0_i32, %c0_i32_0 : i32, i32
  }
  func.func @transform_4(%arg0: i32, %arg1: i32, %arg2: i32) -> (i32, i32) {
    %c0_i32 = arith.constant 0 : i32
    %c0_i32_0 = arith.constant 0 : i32
    %c0_i32_1 = arith.constant 0 : i32
    return %c0_i32, %c0_i32_0 : i32, i32
  }
  func.func @transform_5(%arg0: i32, %arg1: i32, %arg2: i32) -> (i32, i32) {
    %c0_i32 = arith.constant 0 : i32
    %c0_i32_0 = arith.constant 0 : i32
    %c0_i32_1 = arith.constant 0 : i32
    return %c0_i32, %c0_i32_0 : i32, i32
  }
  func.func @transform_6(%arg0: i32, %arg1: i32, %arg2: i32) -> (i32, i32) {
    %c0_i32 = arith.constant 0 : i32
    %c0_i32_0 = arith.constant 0 : i32
    %c0_i32_1 = arith.constant 0 : i32
    return %c0_i32, %c0_i32_0 : i32, i32
  }
  func.func @transform_7(%arg0: i32, %arg1: i32, %arg2: i32) -> (i32, i32, i32, i32) {
    %c0_i32 = arith.constant 0 : i32
    %c0_i32_0 = arith.constant 0 : i32
    %c0_i32_1 = arith.constant 0 : i32
    return %arg0, %arg1, %c0_i32, %c0_i32_0 : i32, i32, i32, i32
  }
}

module attributes {stable_mosaic.version = 11 : i64} {
  func.func @_linear_res_ln_kernel(%arg0: i32, %arg1: i32, %arg2: i32, %arg3: memref<8x64xbf16, #tpu.memory_space<vmem>>, %arg4: memref<64x64xf32, #tpu.memory_space<vmem>>, %arg5: memref<1x64xf32, #tpu.memory_space<vmem>>, %arg6: memref<8x64xbf16, #tpu.memory_space<vmem>>, %arg7: memref<1x64xf32, #tpu.memory_space<vmem>>, %arg8: memref<1x64xf32, #tpu.memory_space<vmem>>, %arg9: memref<8x64xbf16, #tpu.memory_space<vmem>>, %arg10: memref<8x64xf32, #tpu.memory_space<vmem>>) attributes {dimension_semantics = [#tpu.dimension_semantics<parallel>, #tpu.dimension_semantics<parallel>, #tpu.dimension_semantics<arbitrary>], iteration_bounds = array<i64: 1, 1, 1>, scalar_prefetch = 0 : i64, scratch_operands = 1 : i64, tpu.core_type = #tpu.core_type<tc>, window_params = [{transform_indices = @transform_0, window_bounds = array<i64: 8, 64>}, {transform_indices = @transform_1, window_bounds = array<i64: 64, 64>}, {transform_indices = @transform_2, window_bounds = array<i64: 1, 64>}, {transform_indices = @transform_3, window_bounds = array<i64: 8, 64>}, {transform_indices = @transform_4, window_bounds = array<i64: 1, 64>}, {transform_indices = @transform_5, window_bounds = array<i64: 1, 64>}, {transform_indices = @transform_6, window_bounds = array<i64: 8, 64>}]} {
    %c0_i32 = arith.constant 0 : i32
    %0 = arith.cmpi eq, %arg2, %c0_i32 : i32
    %1 = arith.extui %0 : i1 to i32
    %c0_i32_0 = arith.constant 0 : i32
    %2 = arith.cmpi ne, %1, %c0_i32_0 : i32
    scf.if %2 {
      %cst_10 = arith.constant 0.000000e+00 : f32
      %13 = vector.broadcast %cst_10 : f32 to vector<8x64xf32>
      %c0_11 = arith.constant 0 : index
      %c0_12 = arith.constant 0 : index
      %14 = vector.load %arg10[%c0_11, %c0_12] : memref<8x64xf32, #tpu.memory_space<vmem>>, vector<8x64xf32>
      tpu.vector_store %arg10[%c0_11, %c0_12], %13 {strides = array<i32>} : memref<8x64xf32, #tpu.memory_space<vmem>>, vector<8x64xf32>,
    } else {
    }
    %c0 = arith.constant 0 : index
    %c0_1 = arith.constant 0 : index
    %3 = vector.load %arg10[%c0, %c0_1] : memref<8x64xf32, #tpu.memory_space<vmem>>, vector<8x64xf32>
    %c0_2 = arith.constant 0 : index
    %c0_3 = arith.constant 0 : index
    %4 = vector.load %arg3[%c0_2, %c0_3] : memref<8x64xbf16, #tpu.memory_space<vmem>>, vector<8x64xbf16>
    %c0_4 = arith.constant 0 : index
    %c0_5 = arith.constant 0 : index
    %5 = vector.load %arg4[%c0_4, %c0_5] : memref<64x64xf32, #tpu.memory_space<vmem>>, vector<64x64xf32>
    %6 = arith.truncf %5 : vector<64x64xf32> to vector<64x64xbf16>
    %cst = arith.constant dense<0.000000e+00> : vector<8x64xf32>
    %7 = tpu.matmul %4, %6, %cst {dimension_numbers = #tpu.dot_dimension_numbers<[1], [0], [0], [1], [0, 0, 1, 1], [], []>} : vector<8x64xbf16>, vector<64x64xbf16>, vector<8x64xf32> -> vector<8x64xf32>
    %8 = arith.addf %3, %7 : vector<8x64xf32>
    %c0_6 = arith.constant 0 : index
    %c0_7 = arith.constant 0 : index
    %9 = vector.load %arg10[%c0_6, %c0_7] : memref<8x64xf32, #tpu.memory_space<vmem>>, vector<8x64xf32>
    tpu.vector_store %arg10[%c0_6, %c0_7], %8 {strides = array<i32>} : memref<8x64xf32, #tpu.memory_space<vmem>>, vector<8x64xf32>,
    %c0_i32_8 = arith.constant 0 : i32
    %10 = arith.cmpi eq, %arg2, %c0_i32_8 : i32
    %11 = arith.extui %10 : i1 to i32
    %c0_i32_9 = arith.constant 0 : i32
    %12 = arith.cmpi ne, %11, %c0_i32_9 : i32
    scf.if %12 {
      %c0_10 = arith.constant 0 : index
      %c0_11 = arith.constant 0 : index
      %13 = vector.load %arg10[%c0_10, %c0_11] : memref<8x64xf32, #tpu.memory_space<vmem>>, vector<8x64xf32>
      %c0_12 = arith.constant 0 : index
      %c0_13 = arith.constant 0 : index
      %14 = vector.load %arg5[%c0_12, %c0_13] : memref<1x64xf32, #tpu.memory_space<vmem>>, vector<1x64xf32>
      %15 = vector.broadcast %14 : vector<1x64xf32> to vector<8x64xf32>
      %16 = arith.addf %13, %15 : vector<8x64xf32>
      %c0_14 = arith.constant 0 : index
      %c0_15 = arith.constant 0 : index
      %17 = vector.load %arg7[%c0_14, %c0_15] : memref<1x64xf32, #tpu.memory_space<vmem>>, vector<1x64xf32>
      %c0_16 = arith.constant 0 : index
      %c0_17 = arith.constant 0 : index
      %18 = vector.load %arg8[%c0_16, %c0_17] : memref<1x64xf32, #tpu.memory_space<vmem>>, vector<1x64xf32>
      %cst_18 = arith.constant dense<0.000000e+00> : vector<8xf32>
      %19 = vector.multi_reduction <add>, %16, %cst_18 [1] : vector<8x64xf32> to vector<8xf32>
      %20 = vector.shape_cast %19 : vector<8xf32> to vector<8x1xf32>
      %cst_19 = arith.constant 6.400000e+01 : f32
      %21 = vector.broadcast %cst_19 : f32 to vector<8x1xf32>
      %22 = arith.divf %20, %21 : vector<8x1xf32>
      %23 = vector.broadcast %22 : vector<8x1xf32> to vector<8x64xf32>
      %24 = arith.subf %16, %23 : vector<8x64xf32>
      %25 = arith.mulf %24, %24 : vector<8x64xf32>
      %cst_20 = arith.constant dense<0.000000e+00> : vector<8xf32>
      %26 = vector.multi_reduction <add>, %25, %cst_20 [1] : vector<8x64xf32> to vector<8xf32>
      %27 = vector.shape_cast %26 : vector<8xf32> to vector<8x1xf32>
      %cst_21 = arith.constant 6.400000e+01 : f32
      %28 = vector.broadcast %cst_21 : f32 to vector<8x1xf32>
      %29 = arith.divf %27, %28 : vector<8x1xf32>
      %cst_22 = arith.constant 9.99999997E-7 : f32
      %30 = vector.broadcast %cst_22 : f32 to vector<8x1xf32>
      %31 = arith.addf %29, %30 : vector<8x1xf32>
      %32 = math.rsqrt %31 : vector<8x1xf32>
      %33 = vector.broadcast %32 : vector<8x1xf32> to vector<8x64xf32>
      %34 = arith.mulf %24, %33 : vector<8x64xf32>
      %35 = vector.broadcast %17 : vector<1x64xf32> to vector<8x64xf32>
      %36 = arith.mulf %34, %35 : vector<8x64xf32>
      %37 = vector.broadcast %18 : vector<1x64xf32> to vector<8x64xf32>
      %38 = arith.addf %36, %37 : vector<8x64xf32>
      %c0_23 = arith.constant 0 : index
      %c0_24 = arith.constant 0 : index
      %39 = vector.load %arg6[%c0_23, %c0_24] : memref<8x64xbf16, #tpu.memory_space<vmem>>, vector<8x64xbf16>
      %40 = arith.extf %39 : vector<8x64xbf16> to vector<8x64xf32>
      %41 = arith.addf %40, %38 : vector<8x64xf32>
      %42 = arith.truncf %41 : vector<8x64xf32> to vector<8x64xbf16>
      %c0_25 = arith.constant 0 : index
      %c0_26 = arith.constant 0 : index
      %43 = vector.load %arg9[%c0_25, %c0_26] : memref<8x64xbf16, #tpu.memory_space<vmem>>, vector<8x64xbf16>
      tpu.vector_store %arg9[%c0_25, %c0_26], %42 {strides = array<i32>} : memref<8x64xbf16, #tpu.memory_space<vmem>>, vector<8x64xbf16>,
    } else {
    }
    return
  }
  func.func @transform_0(%arg0: i32, %arg1: i32, %arg2: i32) -> (i32, i32) {
    %c0_i32 = arith.constant 0 : i32
    return %arg0, %arg2 : i32, i32
  }
  func.func @transform_1(%arg0: i32, %arg1: i32, %arg2: i32) -> (i32, i32) {
    %c0_i32 = arith.constant 0 : i32
    return %arg2, %arg1 : i32, i32
  }
  func.func @transform_2(%arg0: i32, %arg1: i32, %arg2: i32) -> (i32, i32) {
    %c0_i32 = arith.constant 0 : i32
    %c0_i32_0 = arith.constant 0 : i32
    return %c0_i32, %arg1 : i32, i32
  }
  func.func @transform_3(%arg0: i32, %arg1: i32, %arg2: i32) -> (i32, i32) {
    %c0_i32 = arith.constant 0 : i32
    return %arg0, %arg1 : i32, i32
  }
  func.func @transform_4(%arg0: i32, %arg1: i32, %arg2: i32) -> (i32, i32) {
    %c0_i32 = arith.constant 0 : i32
    %c0_i32_0 = arith.constant 0 : i32
    return %c0_i32, %arg1 : i32, i32
  }
  func.func @transform_5(%arg0: i32, %arg1: i32, %arg2: i32) -> (i32, i32) {
    %c0_i32 = arith.constant 0 : i32
    %c0_i32_0 = arith.constant 0 : i32
    return %c0_i32, %arg1 : i32, i32
  }
  func.func @transform_6(%arg0: i32, %arg1: i32, %arg2: i32) -> (i32, i32) {
    %c0_i32 = arith.constant 0 : i32
    return %arg0, %arg1 : i32, i32
  }
}

module attributes {stable_mosaic.version = 11 : i64} {
  func.func @_linear_res_ln_kernel(%arg0: i32, %arg1: i32, %arg2: i32, %arg3: memref<8x256xbf16, #tpu.memory_space<vmem>>, %arg4: memref<256x64xf32, #tpu.memory_space<vmem>>, %arg5: memref<1x64xf32, #tpu.memory_space<vmem>>, %arg6: memref<8x64xbf16, #tpu.memory_space<vmem>>, %arg7: memref<1x64xf32, #tpu.memory_space<vmem>>, %arg8: memref<1x64xf32, #tpu.memory_space<vmem>>, %arg9: memref<8x64xbf16, #tpu.memory_space<vmem>>, %arg10: memref<8x64xf32, #tpu.memory_space<vmem>>) attributes {dimension_semantics = [#tpu.dimension_semantics<parallel>, #tpu.dimension_semantics<parallel>, #tpu.dimension_semantics<arbitrary>], iteration_bounds = array<i64: 1, 1, 1>, scalar_prefetch = 0 : i64, scratch_operands = 1 : i64, tpu.core_type = #tpu.core_type<tc>, window_params = [{transform_indices = @transform_0, window_bounds = array<i64: 8, 256>}, {transform_indices = @transform_1, window_bounds = array<i64: 256, 64>}, {transform_indices = @transform_2, window_bounds = array<i64: 1, 64>}, {transform_indices = @transform_3, window_bounds = array<i64: 8, 64>}, {transform_indices = @transform_4, window_bounds = array<i64: 1, 64>}, {transform_indices = @transform_5, window_bounds = array<i64: 1, 64>}, {transform_indices = @transform_6, window_bounds = array<i64: 8, 64>}]} {
    %c0_i32 = arith.constant 0 : i32
    %0 = arith.cmpi eq, %arg2, %c0_i32 : i32
    %1 = arith.extui %0 : i1 to i32
    %c0_i32_0 = arith.constant 0 : i32
    %2 = arith.cmpi ne, %1, %c0_i32_0 : i32
    scf.if %2 {
      %cst_10 = arith.constant 0.000000e+00 : f32
      %13 = vector.broadcast %cst_10 : f32 to vector<8x64xf32>
      %c0_11 = arith.constant 0 : index
      %c0_12 = arith.constant 0 : index
      %14 = vector.load %arg10[%c0_11, %c0_12] : memref<8x64xf32, #tpu.memory_space<vmem>>, vector<8x64xf32>
      tpu.vector_store %arg10[%c0_11, %c0_12], %13 {strides = array<i32>} : memref<8x64xf32, #tpu.memory_space<vmem>>, vector<8x64xf32>,
    } else {
    }
    %c0 = arith.constant 0 : index
    %c0_1 = arith.constant 0 : index
    %3 = vector.load %arg10[%c0, %c0_1] : memref<8x64xf32, #tpu.memory_space<vmem>>, vector<8x64xf32>
    %c0_2 = arith.constant 0 : index
    %c0_3 = arith.constant 0 : index
    %4 = vector.load %arg3[%c0_2, %c0_3] : memref<8x256xbf16, #tpu.memory_space<vmem>>, vector<8x256xbf16>
    %c0_4 = arith.constant 0 : index
    %c0_5 = arith.constant 0 : index
    %5 = vector.load %arg4[%c0_4, %c0_5] : memref<256x64xf32, #tpu.memory_space<vmem>>, vector<256x64xf32>
    %6 = arith.truncf %5 : vector<256x64xf32> to vector<256x64xbf16>
    %cst = arith.constant dense<0.000000e+00> : vector<8x64xf32>
    %7 = tpu.matmul %4, %6, %cst {dimension_numbers = #tpu.dot_dimension_numbers<[1], [0], [0], [1], [0, 0, 1, 1], [], []>} : vector<8x256xbf16>, vector<256x64xbf16>, vector<8x64xf32> -> vector<8x64xf32>
    %8 = arith.addf %3, %7 : vector<8x64xf32>
    %c0_6 = arith.constant 0 : index
    %c0_7 = arith.constant 0 : index
    %9 = vector.load %arg10[%c0_6, %c0_7] : memref<8x64xf32, #tpu.memory_space<vmem>>, vector<8x64xf32>
    tpu.vector_store %arg10[%c0_6, %c0_7], %8 {strides = array<i32>} : memref<8x64xf32, #tpu.memory_space<vmem>>, vector<8x64xf32>,
    %c0_i32_8 = arith.constant 0 : i32
    %10 = arith.cmpi eq, %arg2, %c0_i32_8 : i32
    %11 = arith.extui %10 : i1 to i32
    %c0_i32_9 = arith.constant 0 : i32
    %12 = arith.cmpi ne, %11, %c0_i32_9 : i32
    scf.if %12 {
      %c0_10 = arith.constant 0 : index
      %c0_11 = arith.constant 0 : index
      %13 = vector.load %arg10[%c0_10, %c0_11] : memref<8x64xf32, #tpu.memory_space<vmem>>, vector<8x64xf32>
      %c0_12 = arith.constant 0 : index
      %c0_13 = arith.constant 0 : index
      %14 = vector.load %arg5[%c0_12, %c0_13] : memref<1x64xf32, #tpu.memory_space<vmem>>, vector<1x64xf32>
      %15 = vector.broadcast %14 : vector<1x64xf32> to vector<8x64xf32>
      %16 = arith.addf %13, %15 : vector<8x64xf32>
      %c0_14 = arith.constant 0 : index
      %c0_15 = arith.constant 0 : index
      %17 = vector.load %arg7[%c0_14, %c0_15] : memref<1x64xf32, #tpu.memory_space<vmem>>, vector<1x64xf32>
      %c0_16 = arith.constant 0 : index
      %c0_17 = arith.constant 0 : index
      %18 = vector.load %arg8[%c0_16, %c0_17] : memref<1x64xf32, #tpu.memory_space<vmem>>, vector<1x64xf32>
      %cst_18 = arith.constant dense<0.000000e+00> : vector<8xf32>
      %19 = vector.multi_reduction <add>, %16, %cst_18 [1] : vector<8x64xf32> to vector<8xf32>
      %20 = vector.shape_cast %19 : vector<8xf32> to vector<8x1xf32>
      %cst_19 = arith.constant 6.400000e+01 : f32
      %21 = vector.broadcast %cst_19 : f32 to vector<8x1xf32>
      %22 = arith.divf %20, %21 : vector<8x1xf32>
      %23 = vector.broadcast %22 : vector<8x1xf32> to vector<8x64xf32>
      %24 = arith.subf %16, %23 : vector<8x64xf32>
      %25 = arith.mulf %24, %24 : vector<8x64xf32>
      %cst_20 = arith.constant dense<0.000000e+00> : vector<8xf32>
      %26 = vector.multi_reduction <add>, %25, %cst_20 [1] : vector<8x64xf32> to vector<8xf32>
      %27 = vector.shape_cast %26 : vector<8xf32> to vector<8x1xf32>
      %cst_21 = arith.constant 6.400000e+01 : f32
      %28 = vector.broadcast %cst_21 : f32 to vector<8x1xf32>
      %29 = arith.divf %27, %28 : vector<8x1xf32>
      %cst_22 = arith.constant 9.99999997E-7 : f32
      %30 = vector.broadcast %cst_22 : f32 to vector<8x1xf32>
      %31 = arith.addf %29, %30 : vector<8x1xf32>
      %32 = math.rsqrt %31 : vector<8x1xf32>
      %33 = vector.broadcast %32 : vector<8x1xf32> to vector<8x64xf32>
      %34 = arith.mulf %24, %33 : vector<8x64xf32>
      %35 = vector.broadcast %17 : vector<1x64xf32> to vector<8x64xf32>
      %36 = arith.mulf %34, %35 : vector<8x64xf32>
      %37 = vector.broadcast %18 : vector<1x64xf32> to vector<8x64xf32>
      %38 = arith.addf %36, %37 : vector<8x64xf32>
      %c0_23 = arith.constant 0 : index
      %c0_24 = arith.constant 0 : index
      %39 = vector.load %arg6[%c0_23, %c0_24] : memref<8x64xbf16, #tpu.memory_space<vmem>>, vector<8x64xbf16>
      %40 = arith.extf %39 : vector<8x64xbf16> to vector<8x64xf32>
      %41 = arith.addf %40, %38 : vector<8x64xf32>
      %42 = arith.truncf %41 : vector<8x64xf32> to vector<8x64xbf16>
      %c0_25 = arith.constant 0 : index
      %c0_26 = arith.constant 0 : index
      %43 = vector.load %arg9[%c0_25, %c0_26] : memref<8x64xbf16, #tpu.memory_space<vmem>>, vector<8x64xbf16>
      tpu.vector_store %arg9[%c0_25, %c0_26], %42 {strides = array<i32>} : memref<8x64xbf16, #tpu.memory_space<vmem>>, vector<8x64xbf16>,
    } else {
    }
    return
  }
  func.func @transform_0(%arg0: i32, %arg1: i32, %arg2: i32) -> (i32, i32) {
    %c0_i32 = arith.constant 0 : i32
    return %arg0, %arg2 : i32, i32
  }
  func.func @transform_1(%arg0: i32, %arg1: i32, %arg2: i32) -> (i32, i32) {
    %c0_i32 = arith.constant 0 : i32
    return %arg2, %arg1 : i32, i32
  }
  func.func @transform_2(%arg0: i32, %arg1: i32, %arg2: i32) -> (i32, i32) {
    %c0_i32 = arith.constant 0 : i32
    %c0_i32_0 = arith.constant 0 : i32
    return %c0_i32, %arg1 : i32, i32
  }
  func.func @transform_3(%arg0: i32, %arg1: i32, %arg2: i32) -> (i32, i32) {
    %c0_i32 = arith.constant 0 : i32
    return %arg0, %arg1 : i32, i32
  }
  func.func @transform_4(%arg0: i32, %arg1: i32, %arg2: i32) -> (i32, i32) {
    %c0_i32 = arith.constant 0 : i32
    %c0_i32_0 = arith.constant 0 : i32
    return %c0_i32, %arg1 : i32, i32
  }
  func.func @transform_5(%arg0: i32, %arg1: i32, %arg2: i32) -> (i32, i32) {
    %c0_i32 = arith.constant 0 : i32
    %c0_i32_0 = arith.constant 0 : i32
    return %c0_i32, %arg1 : i32, i32
  }
  func.func @transform_6(%arg0: i32, %arg1: i32, %arg2: i32) -> (i32, i32) {
    %c0_i32 = arith.constant 0 : i32
    return %arg0, %arg1 : i32, i32
  }
}

module attributes {stable_mosaic.version = 11 : i64} {
  func.func @_linear_kernel(%arg0: i32, %arg1: i32, %arg2: i32, %arg3: memref<8x64xbf16, #tpu.memory_space<vmem>>, %arg4: memref<64x256xf32, #tpu.memory_space<vmem>>, %arg5: memref<1x256xf32, #tpu.memory_space<vmem>>, %arg6: memref<8x256xbf16, #tpu.memory_space<vmem>>, %arg7: memref<8x256xf32, #tpu.memory_space<vmem>>) attributes {dimension_semantics = [#tpu.dimension_semantics<parallel>, #tpu.dimension_semantics<parallel>, #tpu.dimension_semantics<arbitrary>], iteration_bounds = array<i64: 1, 1, 1>, scalar_prefetch = 0 : i64, scratch_operands = 1 : i64, tpu.core_type = #tpu.core_type<tc>, window_params = [{transform_indices = @transform_0, window_bounds = array<i64: 8, 64>}, {transform_indices = @transform_1, window_bounds = array<i64: 64, 256>}, {transform_indices = @transform_2, window_bounds = array<i64: 1, 256>}, {transform_indices = @transform_3, window_bounds = array<i64: 8, 256>}]} {
    %c0_i32 = arith.constant 0 : i32
    %0 = arith.cmpi eq, %arg2, %c0_i32 : i32
    %1 = arith.extui %0 : i1 to i32
    %c0_i32_0 = arith.constant 0 : i32
    %2 = arith.cmpi ne, %1, %c0_i32_0 : i32
    scf.if %2 {
      %cst_10 = arith.constant 0.000000e+00 : f32
      %13 = vector.broadcast %cst_10 : f32 to vector<8x256xf32>
      %c0_11 = arith.constant 0 : index
      %c0_12 = arith.constant 0 : index
      %14 = vector.load %arg7[%c0_11, %c0_12] : memref<8x256xf32, #tpu.memory_space<vmem>>, vector<8x256xf32>
      tpu.vector_store %arg7[%c0_11, %c0_12], %13 {strides = array<i32>} : memref<8x256xf32, #tpu.memory_space<vmem>>, vector<8x256xf32>,
    } else {
    }
    %c0 = arith.constant 0 : index
    %c0_1 = arith.constant 0 : index
    %3 = vector.load %arg7[%c0, %c0_1] : memref<8x256xf32, #tpu.memory_space<vmem>>, vector<8x256xf32>
    %c0_2 = arith.constant 0 : index
    %c0_3 = arith.constant 0 : index
    %4 = vector.load %arg3[%c0_2, %c0_3] : memref<8x64xbf16, #tpu.memory_space<vmem>>, vector<8x64xbf16>
    %c0_4 = arith.constant 0 : index
    %c0_5 = arith.constant 0 : index
    %5 = vector.load %arg4[%c0_4, %c0_5] : memref<64x256xf32, #tpu.memory_space<vmem>>, vector<64x256xf32>
    %6 = arith.truncf %5 : vector<64x256xf32> to vector<64x256xbf16>
    %cst = arith.constant dense<0.000000e+00> : vector<8x256xf32>
    %7 = tpu.matmul %4, %6, %cst {dimension_numbers = #tpu.dot_dimension_numbers<[1], [0], [0], [1], [0, 0, 1, 1], [], []>} : vector<8x64xbf16>, vector<64x256xbf16>, vector<8x256xf32> -> vector<8x256xf32>
    %8 = arith.addf %3, %7 : vector<8x256xf32>
    %c0_6 = arith.constant 0 : index
    %c0_7 = arith.constant 0 : index
    %9 = vector.load %arg7[%c0_6, %c0_7] : memref<8x256xf32, #tpu.memory_space<vmem>>, vector<8x256xf32>
    tpu.vector_store %arg7[%c0_6, %c0_7], %8 {strides = array<i32>} : memref<8x256xf32, #tpu.memory_space<vmem>>, vector<8x256xf32>,
    %c0_i32_8 = arith.constant 0 : i32
    %10 = arith.cmpi eq, %arg2, %c0_i32_8 : i32
    %11 = arith.extui %10 : i1 to i32
    %c0_i32_9 = arith.constant 0 : i32
    %12 = arith.cmpi ne, %11, %c0_i32_9 : i32
    scf.if %12 {
      %c0_10 = arith.constant 0 : index
      %c0_11 = arith.constant 0 : index
      %13 = vector.load %arg7[%c0_10, %c0_11] : memref<8x256xf32, #tpu.memory_space<vmem>>, vector<8x256xf32>
      %c0_12 = arith.constant 0 : index
      %c0_13 = arith.constant 0 : index
      %14 = vector.load %arg5[%c0_12, %c0_13] : memref<1x256xf32, #tpu.memory_space<vmem>>, vector<1x256xf32>
      %15 = vector.broadcast %14 : vector<1x256xf32> to vector<8x256xf32>
      %16 = arith.addf %13, %15 : vector<8x256xf32>
      %cst_14 = arith.constant 5.000000e-01 : f32
      %17 = vector.broadcast %cst_14 : f32 to vector<8x256xf32>
      %18 = arith.mulf %17, %16 : vector<8x256xf32>
      %cst_15 = arith.constant 0.707106769 : f32
      %19 = vector.broadcast %cst_15 : f32 to vector<8x256xf32>
      %20 = arith.mulf %16, %19 : vector<8x256xf32>
      %cst_16 = arith.constant 0.000000e+00 : f32
      %21 = vector.broadcast %cst_16 : f32 to vector<8x256xf32>
      %22 = arith.cmpf oge, %20, %21 : vector<8x256xf32>
      %cst_17 = arith.constant 1.000000e+00 : f32
      %cst_18 = arith.constant -1.000000e+00 : f32
      %23 = vector.broadcast %cst_17 : f32 to vector<8x256xf32>
      %24 = vector.broadcast %cst_18 : f32 to vector<8x256xf32>
      %25 = arith.select %22, %23, %24 : vector<8x256xi1>, vector<8x256xf32>
      %26 = math.absf %20 : vector<8x256xf32>
      %cst_19 = arith.constant 0.327591091 : f32
      %27 = vector.broadcast %cst_19 : f32 to vector<8x256xf32>
      %28 = arith.mulf %27, %26 : vector<8x256xf32>
      %cst_20 = arith.constant 1.000000e+00 : f32
      %29 = vector.broadcast %cst_20 : f32 to vector<8x256xf32>
      %30 = arith.addf %29, %28 : vector<8x256xf32>
      %31 = tpu.reciprocal %30 {approx = true} : vector<8x256xf32> -> vector<8x256xf32>
      %cst_21 = arith.constant 1.06140542 : f32
      %32 = vector.broadcast %cst_21 : f32 to vector<8x256xf32>
      %33 = arith.mulf %32, %31 : vector<8x256xf32>
      %cst_22 = arith.constant -1.45315206 : f32
      %34 = vector.broadcast %cst_22 : f32 to vector<8x256xf32>
      %35 = arith.addf %33, %34 : vector<8x256xf32>
      %36 = arith.mulf %35, %31 : vector<8x256xf32>
      %cst_23 = arith.constant 1.42141378 : f32
      %37 = vector.broadcast %cst_23 : f32 to vector<8x256xf32>
      %38 = arith.addf %36, %37 : vector<8x256xf32>
      %39 = arith.mulf %38, %31 : vector<8x256xf32>
      %cst_24 = arith.constant -0.284496725 : f32
      %40 = vector.broadcast %cst_24 : f32 to vector<8x256xf32>
      %41 = arith.addf %39, %40 : vector<8x256xf32>
      %42 = arith.mulf %41, %31 : vector<8x256xf32>
      %cst_25 = arith.constant 0.254829586 : f32
      %43 = vector.broadcast %cst_25 : f32 to vector<8x256xf32>
      %44 = arith.addf %42, %43 : vector<8x256xf32>
      %45 = arith.mulf %44, %31 : vector<8x256xf32>
      %cst_26 = arith.constant 0.000000e+00 : f32
      %46 = vector.broadcast %cst_26 : f32 to vector<8x256xf32>
      %47 = arith.subf %46, %26 : vector<8x256xf32>
      %48 = arith.mulf %47, %26 : vector<8x256xf32>
      %49 = math.exp %48 : vector<8x256xf32>
      %50 = arith.mulf %45, %49 : vector<8x256xf32>
      %cst_27 = arith.constant 1.000000e+00 : f32
      %51 = vector.broadcast %cst_27 : f32 to vector<8x256xf32>
      %52 = arith.subf %51, %50 : vector<8x256xf32>
      %53 = arith.mulf %25, %52 : vector<8x256xf32>
      %cst_28 = arith.constant 1.000000e+00 : f32
      %54 = vector.broadcast %cst_28 : f32 to vector<8x256xf32>
      %55 = arith.addf %54, %53 : vector<8x256xf32>
      %56 = arith.mulf %18, %55 : vector<8x256xf32>
      %57 = arith.truncf %56 : vector<8x256xf32> to vector<8x256xbf16>
      %c0_29 = arith.constant 0 : index
      %c0_30 = arith.constant 0 : index
      %58 = vector.load %arg6[%c0_29, %c0_30] : memref<8x256xbf16, #tpu.memory_space<vmem>>, vector<8x256xbf16>
      tpu.vector_store %arg6[%c0_29, %c0_30], %57 {strides = array<i32>} : memref<8x256xbf16, #tpu.memory_space<vmem>>, vector<8x256xbf16>,
    } else {
    }
    return
  }
  func.func @transform_0(%arg0: i32, %arg1: i32, %arg2: i32) -> (i32, i32) {
    %c0_i32 = arith.constant 0 : i32
    return %arg0, %arg2 : i32, i32
  }
  func.func @transform_1(%arg0: i32, %arg1: i32, %arg2: i32) -> (i32, i32) {
    %c0_i32 = arith.constant 0 : i32
    return %arg2, %arg1 : i32, i32
  }
  func.func @transform_2(%arg0: i32, %arg1: i32, %arg2: i32) -> (i32, i32) {
    %c0_i32 = arith.constant 0 : i32
    %c0_i32_0 = arith.constant 0 : i32
    return %c0_i32, %arg1 : i32, i32
  }
  func.func @transform_3(%arg0: i32, %arg1: i32, %arg2: i32) -> (i32, i32) {
    %c0_i32 = arith.constant 0 : i32
    return %arg0, %arg1 : i32, i32
  }
}

module attributes {stable_mosaic.version = 11 : i64} {
  func.func @_pool_head_kernel(%arg0: i32, %arg1: memref<1x4x64xbf16, #tpu.memory_space<vmem>>, %arg2: memref<1x64xf32, #tpu.memory_space<vmem>>, %arg3: memref<1x64xf32, #tpu.memory_space<vmem>>, %arg4: memref<64x3xf32, #tpu.memory_space<vmem>>, %arg5: memref<1x3xf32, #tpu.memory_space<vmem>>, %arg6: memref<2x3xf32, #tpu.memory_space<vmem>>, %arg7: memref<2x64xf32, #tpu.memory_space<vmem>>) attributes {dimension_semantics = [#tpu.dimension_semantics<arbitrary>], iteration_bounds = array<i64: 2>, scalar_prefetch = 0 : i64, scratch_operands = 1 : i64, tpu.core_type = #tpu.core_type<tc>, window_params = [{transform_indices = @transform_0, window_bounds = array<i64: 1, 4, 64>}, {pipeline_mode = #tpu.pipeline_mode<synchronous>, transform_indices = @transform_1, window_bounds = array<i64: 1, 64>}, {pipeline_mode = #tpu.pipeline_mode<synchronous>, transform_indices = @transform_2, window_bounds = array<i64: 1, 64>}, {pipeline_mode = #tpu.pipeline_mode<synchronous>, transform_indices = @transform_3, window_bounds = array<i64: 64, 3>}, {pipeline_mode = #tpu.pipeline_mode<synchronous>, transform_indices = @transform_4, window_bounds = array<i64: 1, 3>}, {pipeline_mode = #tpu.pipeline_mode<synchronous>, transform_indices = @transform_5, window_bounds = array<i64: 2, 3>}]} {
    %c0 = arith.constant 0 : index
    %c0_0 = arith.constant 0 : index
    %c0_1 = arith.constant 0 : index
    %0 = vector.load %arg1[%c0, %c0_0, %c0_1] : memref<1x4x64xbf16, #tpu.memory_space<vmem>>, vector<1x4x64xbf16>
    %1 = vector.shape_cast %0 : vector<1x4x64xbf16> to vector<4x64xbf16>
    %c0_2 = arith.constant 0 : index
    %c0_3 = arith.constant 0 : index
    %2 = vector.load %arg2[%c0_2, %c0_3] : memref<1x64xf32, #tpu.memory_space<vmem>>, vector<1x64xf32>
    %c0_4 = arith.constant 0 : index
    %c0_5 = arith.constant 0 : index
    %3 = vector.load %arg3[%c0_4, %c0_5] : memref<1x64xf32, #tpu.memory_space<vmem>>, vector<1x64xf32>
    %4 = arith.extf %1 : vector<4x64xbf16> to vector<4x64xf32>
    %cst = arith.constant dense<0.000000e+00> : vector<4xf32>
    %5 = vector.multi_reduction <add>, %4, %cst [1] : vector<4x64xf32> to vector<4xf32>
    %6 = vector.shape_cast %5 : vector<4xf32> to vector<4x1xf32>
    %cst_6 = arith.constant 6.400000e+01 : f32
    %7 = vector.broadcast %cst_6 : f32 to vector<4x1xf32>
    %8 = arith.divf %6, %7 : vector<4x1xf32>
    %9 = vector.broadcast %8 : vector<4x1xf32> to vector<4x64xf32>
    %10 = arith.subf %4, %9 : vector<4x64xf32>
    %11 = arith.mulf %10, %10 : vector<4x64xf32>
    %cst_7 = arith.constant dense<0.000000e+00> : vector<4xf32>
    %12 = vector.multi_reduction <add>, %11, %cst_7 [1] : vector<4x64xf32> to vector<4xf32>
    %13 = vector.shape_cast %12 : vector<4xf32> to vector<4x1xf32>
    %cst_8 = arith.constant 6.400000e+01 : f32
    %14 = vector.broadcast %cst_8 : f32 to vector<4x1xf32>
    %15 = arith.divf %13, %14 : vector<4x1xf32>
    %cst_9 = arith.constant 9.99999997E-7 : f32
    %16 = vector.broadcast %cst_9 : f32 to vector<4x1xf32>
    %17 = arith.addf %15, %16 : vector<4x1xf32>
    %18 = math.rsqrt %17 : vector<4x1xf32>
    %19 = vector.broadcast %18 : vector<4x1xf32> to vector<4x64xf32>
    %20 = arith.mulf %10, %19 : vector<4x64xf32>
    %21 = vector.broadcast %2 : vector<1x64xf32> to vector<4x64xf32>
    %22 = arith.mulf %20, %21 : vector<4x64xf32>
    %23 = vector.broadcast %3 : vector<1x64xf32> to vector<4x64xf32>
    %24 = arith.addf %22, %23 : vector<4x64xf32>
    %cst_10 = arith.constant dense<0.000000e+00> : vector<64xf32>
    %25 = vector.multi_reduction <add>, %24, %cst_10 [0] : vector<4x64xf32> to vector<64xf32>
    %26 = vector.shape_cast %25 : vector<64xf32> to vector<1x64xf32>
    %cst_11 = arith.constant 4.000000e+00 : f32
    %27 = vector.broadcast %cst_11 : f32 to vector<1x64xf32>
    %28 = arith.divf %26, %27 : vector<1x64xf32>
    %29 = arith.index_cast %arg0 : i32 to index
    %c0_12 = arith.constant 0 : index
    %30 = vector.load %arg7[%29, %c0_12] : memref<2x64xf32, #tpu.memory_space<vmem>>, vector<1x64xf32>
    tpu.vector_store %arg7[%29, %c0_12], %28 {strides = array<i32>} : memref<2x64xf32, #tpu.memory_space<vmem>>, vector<1x64xf32>,
    %c1_i32 = arith.constant 1 : i32
    %31 = arith.cmpi eq, %arg0, %c1_i32 : i32
    %32 = arith.extui %31 : i1 to i32
    %c0_i32 = arith.constant 0 : i32
    %33 = arith.cmpi ne, %32, %c0_i32 : i32
    scf.if %33 {
      %c0_13 = arith.constant 0 : index
      %c0_14 = arith.constant 0 : index
      %34 = vector.load %arg7[%c0_13, %c0_14] : memref<2x64xf32, #tpu.memory_space<vmem>>, vector<2x64xf32>
      %c0_15 = arith.constant 0 : index
      %c0_16 = arith.constant 0 : index
      %35 = vector.load %arg4[%c0_15, %c0_16] : memref<64x3xf32, #tpu.memory_space<vmem>>, vector<64x3xf32>
      %cst_17 = arith.constant dense<0.000000e+00> : vector<2x3xf32>
      %36 = tpu.matmul %34, %35, %cst_17 {dimension_numbers = #tpu.dot_dimension_numbers<[1], [0], [0], [1], [0, 0, 1, 1], [], []>} : vector<2x64xf32>, vector<64x3xf32>, vector<2x3xf32> -> vector<2x3xf32>
      %c0_18 = arith.constant 0 : index
      %c0_19 = arith.constant 0 : index
      %37 = vector.load %arg5[%c0_18, %c0_19] : memref<1x3xf32, #tpu.memory_space<vmem>>, vector<1x3xf32>
      %38 = vector.broadcast %37 : vector<1x3xf32> to vector<2x3xf32>
      %39 = arith.addf %36, %38 : vector<2x3xf32>
      %c0_20 = arith.constant 0 : index
      %c0_21 = arith.constant 0 : index
      %40 = vector.load %arg6[%c0_20, %c0_21] : memref<2x3xf32, #tpu.memory_space<vmem>>, vector<2x3xf32>
      tpu.vector_store %arg6[%c0_20, %c0_21], %39 {strides = array<i32>} : memref<2x3xf32, #tpu.memory_space<vmem>>, vector<2x3xf32>,
    } else {
    }
    return
  }
  func.func @transform_0(%arg0: i32) -> (i32, i32, i32) {
    %c0_i32 = arith.constant 0 : i32
    %c0_i32_0 = arith.constant 0 : i32
    %c0_i32_1 = arith.constant 0 : i32
    return %arg0, %c0_i32, %c0_i32_0 : i32, i32, i32
  }
  func.func @transform_1(%arg0: i32) -> (i32, i32) {
    %c0_i32 = arith.constant 0 : i32
    %c0_i32_0 = arith.constant 0 : i32
    %c0_i32_1 = arith.constant 0 : i32
    return %c0_i32, %c0_i32_0 : i32, i32
  }
  func.func @transform_2(%arg0: i32) -> (i32, i32) {
    %c0_i32 = arith.constant 0 : i32
    %c0_i32_0 = arith.constant 0 : i32
    %c0_i32_1 = arith.constant 0 : i32
    return %c0_i32, %c0_i32_0 : i32, i32
  }
  func.func @transform_3(%arg0: i32) -> (i32, i32) {
    %c0_i32 = arith.constant 0 : i32
    %c0_i32_0 = arith.constant 0 : i32
    %c0_i32_1 = arith.constant 0 : i32
    return %c0_i32, %c0_i32_0 : i32, i32
  }
  func.func @transform_4(%arg0: i32) -> (i32, i32) {
    %c0_i32 = arith.constant 0 : i32
    %c0_i32_0 = arith.constant 0 : i32
    %c0_i32_1 = arith.constant 0 : i32
    return %c0_i32, %c0_i32_0 : i32, i32
  }
  func.func @transform_5(%arg0: i32) -> (i32, i32) {
    %c0_i32 = arith.constant 0 : i32
    %c0_i32_0 = arith.constant 0 : i32
    %c0_i32_1 = arith.constant 0 : i32
    return %c0_i32, %c0_i32_0 : i32, i32
  }
}

</mosaic_0001>

<bundles_post_ra>
// kernel: vit_relpos_forward.14
= control target key start
LH: loop header
LB: loop body
LE: loop exit
PB: predicated region body
PF: predicated region fallthrough
CT: control target
= control target key end

     0   :  { %vm18_vm0 = vcmask 523264   ;;  %v39_v15 = vlaneseq  ;;  %vm72_vm1 = vcmask 1043456   ;;  %vm73_vm2 = vcmask 523268   ;;  %s119_s0 = inlined_call_operand.vmem [shape: f32[8,192], index: 0, kind: input, shape index: {}]   ;;  %s120_s1 = inlined_call_operand.vmem [shape: f32[1,192], index: 1, kind: input, shape index: {}]   ;;  %s121_s2 = inlined_call_operand.vmem [shape: f32[1,192], index: 2, kind: input, shape index: {}]   ;;  %s122_s3 = inlined_call_operand.vmem [shape: bf16[8,192], index: 3, kind: output, shape index: {}]  }
   0x1   :  { %v14_v0 = vld [vmem:[%s119_s0] sm:$0xff]  ;;  %v15_v1 = vld [vmem:[%s119_s0 + $0x8] sm:$0xff]  ;;  %vm74_vm3 = vmor %vm73_vm2, %vm72_vm1 }
   0x2   :  { %v19_v2 = vsel %vm18_vm0, %v15_v1, 0.0  ;;  %v40_v16 = vshrl.u32 %v39_v15, 7  ;;  %v16_v19 = vld [vmem:[%s120_s1] sm:$0x3] }
   0x3   :  { %v20_v3 = vadd.f32 %v19_v2, %v14_v0  ;;  %v17_v20 = vld [vmem:[%s121_s2] sm:$0x3] }
   0x4   :  { %v41_v17 = vsub.s32 0, %v40_v16  ;;  %v45_v18 = vsub.s32 1, %v40_v16 }
   0x5   :  { %21 = vadd.xlane.f32.xlu0 %v20_v3 }
   0x6   :  { %v42_v21 = vrot.slane %v16_v19, %v41_v17  ;;  %v46_v22 = vrot.slane %v16_v19, %v45_v18  ;;  %v55_v24 = vrot.slane %v17_v20, %v41_v17  ;;  %v59_v25 = vrot.slane %v17_v20, %v45_v18 }
  0x8e   :  { %v22_v4 = vpop.xlane.xlu0 %21 }
  0x8f   :  { %v24_v5 = vmul.f32 0.0052083335, %v22_v4 }
  0x91   :  { %v25_v6 = vsub.f32 %v14_v0, %v24_v5  ;;  %v26_v7 = vsub.f32 %v15_v1, %v24_v5 }
  0x93   :  { %v27_v8 = vmul.f32 %v25_v6, %v25_v6  ;;  %v28_v9 = vmul.f32 %v26_v7, %v26_v7 }
  0x95   :  { %v29_v10 = vsel %vm18_vm0, %v28_v9, 0.0 }
  0x96   :  { %v30_v11 = vadd.f32 %v29_v10, %v27_v8 }
  0x98   :  { %31 = vadd.xlane.f32.xlu0 %v30_v11 }
 0x121   :  { %v32_v12 = vpop.xlane.xlu0 %31 }
 0x122   :  { %v33_v13 = vmul.f32 0.0052083335, %v32_v12 }
 0x124   :  { %v34_v14 = vadd.f32 1e-06, %v33_v13 }
 0x126   :  { %82 = vrsqrt.f32 %v34_v14 }
 0x133   :  { %v83_v23 = vpop.eup %82 }
 0x134   :  { %v36_v26 = vmul.f32 %v83_v23, %v25_v6  ;;  %v37_v27 = vmul.f32 %v83_v23, %v26_v7 }
 0x136   :  { %v49_v28 = vmul.f32 %v42_v21, %v36_v26  ;;  %v50_v29 = vmul.f32 %v46_v22, %v37_v27 }
 0x138   :  { %v62_v30 = vadd.f32 %v55_v24, %v49_v28  ;;  %v63_v31 = vadd.f32 %v59_v25, %v50_v29 }
 0x13a   :  { %v81_v32 = vpack.c.bf16 %v63_v31, %v62_v30 }
 0x13c   :  { %75 = vst.msk [vmem:[%s122_s3] sm:$0xff] %vm74_vm3, %v81_v32 }

// kernel: vit_relpos_forward.16
= control target key start
LH: loop header
LB: loop body
LE: loop exit
PB: predicated region body
PF: predicated region fallthrough
CT: control target
= control target key end

     0   :  { %vm18_vm0 = vcmask 523264   ;;  %vm48_vm1 = vcmask 519168   ;;  %s90_s0 = inlined_call_operand.vmem [shape: bf16[8,64], index: 0, kind: input, shape index: {}]   ;;  %s91_s1 = inlined_call_operand.vmem [shape: f32[1,64], index: 1, kind: input, shape index: {}]   ;;  %s92_s2 = inlined_call_operand.vmem [shape: f32[1,64], index: 2, kind: input, shape index: {}]   ;;  %s93_s3 = inlined_call_operand.vmem [shape: bf16[8,64], index: 3, kind: output, shape index: {}]  }
   0x1   :  { %v14_v0 = vld [vmem:[%s90_s0] sm:$0xf] }
   0x2   :  { %v17_v1 = vunpack.c.l.bf16 %v14_v0  ;;  %v54_v12 = vld [vmem:[%s91_s1] ss:$0 sm:$0xff] }
   0x3   :  { %v55_v14 = vld [vmem:[%s92_s2] ss:$0 sm:$0xff] }
   0x4   :  { %v19_v2 = vsel %vm18_vm0, %v17_v1, 0.0 }
   0x5   :  { %20 = vadd.xlane.f32.xlu0 %v19_v2 }
  0x8e   :  { %v21_v3 = vpop.xlane.xlu0 %20 }
  0x8f   :  { %v23_v4 = vmul.f32 0.015625, %v21_v3 }
  0x91   :  { %v24_v5 = vsub.f32 %v17_v1, %v23_v4 }
  0x93   :  { %v25_v6 = vmul.f32 %v24_v5, %v24_v5 }
  0x95   :  { %v26_v7 = vsel %vm18_vm0, %v25_v6, 0.0 }
  0x96   :  { %27 = vadd.xlane.f32.xlu0 %v26_v7 }
 0x11f   :  { %v28_v8 = vpop.xlane.xlu0 %27 }
 0x120   :  { %v29_v9 = vmul.f32 0.015625, %v28_v8 }
 0x122   :  { %v30_v10 = vadd.f32 1e-06, %v29_v9 }
 0x124   :  { %56 = vrsqrt.f32 %v30_v10 }
 0x131   :  { %v57_v11 = vpop.eup %56 }
 0x132   :  { %v32_v13 = vmul.f32 %v57_v11, %v24_v5 }
 0x134   :  { %v39_v15 = vmul.f32 %v54_v12, %v32_v13 }
 0x136   :  { %v46_v16 = vadd.f32 %v55_v14, %v39_v15 }
 0x138   :  { %v47_v17 = vpack.c.bf16 %v46_v16, %v46_v16 }
 0x13a   :  { %49 = vst.msk [vmem:[%s93_s3] sm:$0xf] %vm48_vm1, %v47_v17 }

// kernel: vit_relpos_forward.15
= control target key start
LH: loop header
LB: loop body
LE: loop exit
PB: predicated region body
PF: predicated region fallthrough
CT: control target
= control target key end

     0   :  { %vm19_vm0 = vcmask 523264   ;;  %v138_v0 = vmov 0   ;;  %v139_v4 = vmov 0.0   ;;  %vm124_vm1 = vcmask 519168   ;;  %s256_s1 = inlined_call_operand.vmem [shape: f32[192,64], index: 1, kind: input, shape index: {}]   ;;  %s257_s0 = inlined_call_operand.vmem [shape: bf16[8,192], index: 0, kind: input, shape index: {}]   ;;  %s258_s2 = inlined_call_operand.vmem [shape: f32[1,64], index: 2, kind: input, shape index: {}]   ;;  %s259_s3 = inlined_call_operand.vmem [shape: bf16[8,64], index: 3, kind: output, shape index: {}]  }
   0x1   :  { %69 = vmatprep.subr.bf16.mxu0 %v138_v0  ;;  %v37_v1 = vld [vmem:[%s256_s1 + $0x70] sm:$0xff]  ;;  %v38_v2 = vld [vmem:[%s256_s1 + $0x78] sm:$0xff]  ;;  %v35_v3 = vld [vmem:[%s256_s1 + $0x60] sm:$0xff]  ;;  %20 = vst.msk [vmem:[#allocation2] sm:$0xff] %vm19_vm0, %v139_v4 }
   0x2   :  { %v54_v5 = vpack.c.bf16 %v38_v2, %v37_v1  ;;  %v36_v6 = vld [vmem:[%s256_s1 + $0x68] sm:$0xff]  ;;  %v33_v8 = vld [vmem:[%s256_s1 + $0x50] sm:$0xff]  ;;  %v34_v9 = vld [vmem:[%s256_s1 + $0x58] sm:$0xff] }
   0x3   :  { %v53_v7 = vpack.c.bf16 %v36_v6, %v35_v3  ;;  %v52_v10 = vpack.c.bf16 %v34_v9, %v33_v8  ;;  %v31_v11 = vld [vmem:[%s256_s1 + $0x40] sm:$0xff]  ;;  %v32_v12 = vld [vmem:[%s256_s1 + $0x48] sm:$0xff]  ;;  %v29_v16 = vld [vmem:[%s256_s1 + $0x30] sm:$0xff] }
   0x4   :  { %70 = vmatpush1.bf16.msra.mxu0 %v54_v5  ;;  %v22_v13 = vld [vmem:[%s257_s0] sm:$0xff]  ;;  %v51_v15 = vpack.c.bf16 %v32_v12, %v31_v11  ;;  %v30_v17 = vld [vmem:[%s256_s1 + $0x38] sm:$0xff]  ;;  %v28_v20 = vld [vmem:[%s256_s1 + $0x28] sm:$0xff] }
   0x5   :  { %71 = vmatprep.subr.bf16.mxu0 %v138_v0  ;;  %v131_v14 = vcombine.high %v22_v13, %v22_v13  ;;  %v50_v18 = vpack.c.bf16 %v30_v17, %v29_v16  ;;  %v27_v19 = vld [vmem:[%s256_s1 + $0x20] sm:$0xff]  ;;  %v25_v22 = vld [vmem:[%s256_s1 + $0x10] sm:$0xff]  ;;  %v26_v23 = vld [vmem:[%s256_s1 + $0x18] sm:$0xff]  ;;  %v130_v40 = vcombine.low %v22_v13, %v22_v13 }
   0x6   :  { %v49_v21 = vpack.c.bf16 %v28_v20, %v27_v19  ;;  %v48_v24 = vpack.c.bf16 %v26_v23, %v25_v22  ;;  %v23_v25 = vld [vmem:[%s256_s1] sm:$0xff]  ;;  %v24_v26 = vld [vmem:[%s256_s1 + $0x8] sm:$0xff]  ;;  %v45_v28 = vld [vmem:[%s256_s1 + $0xb0] sm:$0xff] }
   0x7   :  { %132 = vmatprep.mubr.msk.bf16.mxu0 %vm19_vm0, %v131_v14  ;;  %v47_v27 = vpack.c.bf16 %v24_v26, %v23_v25  ;;  %v46_v29 = vld [vmem:[%s256_s1 + $0xb8] sm:$0xff]  ;;  %v43_v31 = vld [vmem:[%s256_s1 + $0xa0] sm:$0xff]  ;;  %v44_v32 = vld [vmem:[%s256_s1 + $0xa8] sm:$0xff] }
   0x8   :  { %72 = vmatpush1.bf16.msra.mxu0 %v53_v7  ;;  %v58_v30 = vpack.c.bf16 %v46_v29, %v45_v28  ;;  %v57_v33 = vpack.c.bf16 %v44_v32, %v43_v31  ;;  %v41_v34 = vld [vmem:[%s256_s1 + $0x90] sm:$0xff]  ;;  %v42_v35 = vld [vmem:[%s256_s1 + $0x98] sm:$0xff]  ;;  %v39_v37 = vld [vmem:[%s256_s1 + $0x80] sm:$0xff] }
   0x9   :  { %73 = vmatprep.subr.bf16.mxu0 %v138_v0  ;;  %v56_v36 = vpack.c.bf16 %v42_v35, %v41_v34  ;;  %v40_v38 = vld [vmem:[%s256_s1 + $0x88] sm:$0xff]  ;;  %v21_v41 = vld [vmem:[#allocation2] sm:$0xff] }
   0xa   :  { %v55_v39 = vpack.c.bf16 %v40_v38, %v39_v37  ;;  %v133_v47 = vld [vmem:[%s258_s2] ss:$0 sm:$0xff] }
   0xc   :  { %74 = vmatpush1.bf16.msra.mxu0 %v52_v10 }
   0xd   :  { %75 = vmatprep.subr.bf16.mxu0 %v138_v0 }
  0x10   :  { %76 = vmatpush1.bf16.msra.mxu0 %v51_v15 }
  0x11   :  { %77 = vmatprep.subr.bf16.mxu0 %v138_v0 }
  0x14   :  { %78 = vmatpush1.bf16.msra.mxu0 %v50_v18 }
  0x15   :  { %79 = vmatprep.subr.bf16.mxu0 %v138_v0 }
  0x18   :  { %80 = vmatpush1.bf16.msra.mxu0 %v49_v21 }
  0x19   :  { %81 = vmatprep.subr.bf16.mxu0 %v138_v0 }
  0x1c   :  { %82 = vmatpush1.bf16.msra.mxu0 %v48_v24 }
  0x1d   :  { %83 = vmatprep.subr.bf16.mxu0 %v138_v0 }
  0x20   :  { %84 = vmatpush1.bf16.msra.mxu0 %v47_v27 }
  0x21   :  { %93 = vmatprep.subr.bf16.mxu0 %v138_v0 }
  0x24   :  { %94 = vmatpush2.bf16.msra.mxu0 %v58_v30 }
  0x25   :  { %95 = vmatprep.subr.bf16.mxu0 %v138_v0 }
  0x28   :  { %96 = vmatpush2.bf16.msra.mxu0 %v57_v33 }
  0x29   :  { %97 = vmatprep.subr.bf16.mxu0 %v138_v0 }
  0x2c   :  { %98 = vmatpush2.bf16.msra.mxu0 %v56_v36 }
  0x2d   :  { %99 = vmatprep.subr.bf16.mxu0 %v138_v0 }
  0x30   :  { %100 = vmatpush2.bf16.msra.mxu0 %v55_v39 }
  0x33   :  { %102 = vmatmul.mubr.bf16.vlgmr.msra.gmra.mxu0 %v130_v40 }
  0xf3   :  { %v103_v42 = vpop.f32.mrf.mxu0 }
  0xf4   :  { %v109_v43 = vadd.f32 %v103_v42, %v21_v41 }
  0xf5   :  { %v105_v44 = vpop.f32.mrf.mxu0 }
  0xf6   :  { %110 = vst.msk [vmem:[#allocation2] sm:$0xff] %vm19_vm0, %v109_v43 }
  0xf7   :  { %v106_v45 = vpop.f32.mrf.mxu0 }
  0xf9   :  { %v107_v46 = vpop.f32.mrf.mxu0 }
  0xfd   :  { %v114_v48 = vld [vmem:[#allocation2] sm:$0xff] }
  0xfe   :  { %v122_v49 = vadd.f32 %v133_v47, %v114_v48 }
 0x100   :  { %v123_v50 = vpack.c.bf16 %v122_v49, %v122_v49 }
 0x102   :  { %125 = vst.msk [vmem:[%s259_s3] sm:$0xf] %vm124_vm1, %v123_v50 }

// kernel: vit_relpos_forward.17
= control target key start
LH: loop header
LB: loop body
LE: loop exit
PB: predicated region body
PF: predicated region fallthrough
CT: control target
= control target key end

     0   :  { %vm20_vm0 = vcmask 523264   ;;  %v138_v3 = vmov 0   ;;  %v139_v4 = vmov 0.0   ;;  %v105_v27 = vlaneseq  ;;  %s220_s1 = inlined_call_operand.vmem [shape: f32[64,192], index: 1, kind: input, shape index: {}]   ;;  %s221_s0 = inlined_call_operand.vmem [shape: bf16[8,64], index: 0, kind: input, shape index: {}]   ;;  %s222_s2 = inlined_call_operand.vmem [shape: f32[1,192], index: 2, kind: input, shape index: {}]   ;;  %s223_s3 = inlined_call_operand.vmem [shape: bf16[8,192], index: 3, kind: output, shape index: {}]  }
   0x1   :  { %v38_v0 = vld [vmem:[%s220_s1 + $0x68] sm:$0xff]  ;;  %v40_v1 = vld [vmem:[%s220_s1 + $0x78] sm:$0xff]  ;;  %v37_v2 = vld [vmem:[%s220_s1 + $0x60] sm:$0xff]  ;;  %85 = vmatprep.mubr.bf16.mxu0 %v138_v3  ;;  %21 = vst.msk [vmem:[#allocation2 + $0x8] sm:$0xff] %vm20_vm0, %v139_v4  ;;  %vm125_vm1 = vcmask 1043456   ;;  %vm126_vm2 = vcmask 523268  }
   0x2   :  { %v48_v5 = vpack.c.bf16 %v40_v1, %v38_v0  ;;  %v39_v6 = vld [vmem:[%s220_s1 + $0x70] sm:$0xff]  ;;  %v34_v7 = vld [vmem:[%s220_s1 + $0x48] sm:$0xff]  ;;  %v36_v8 = vld [vmem:[%s220_s1 + $0x58] sm:$0xff]  ;;  %v106_v30 = vshrl.u32 %v105_v27, 7 }
   0x3   :  { %v47_v9 = vpack.c.bf16 %v39_v6, %v37_v2  ;;  %v46_v10 = vpack.c.bf16 %v36_v8, %v34_v7  ;;  %v33_v11 = vld [vmem:[%s220_s1 + $0x40] sm:$0xff]  ;;  %v35_v12 = vld [vmem:[%s220_s1 + $0x50] sm:$0xff]  ;;  %v30_v13 = vld [vmem:[%s220_s1 + $0x28] sm:$0xff] }
   0x4   :  { %61 = vmatprep.subr.bf16.mxu0 %v48_v5  ;;  %v32_v14 = vld [vmem:[%s220_s1 + $0x38] sm:$0xff]  ;;  %v45_v15 = vpack.c.bf16 %v35_v12, %v33_v11  ;;  %v29_v17 = vld [vmem:[%s220_s1 + $0x20] sm:$0xff]  ;;  %v31_v18 = vld [vmem:[%s220_s1 + $0x30] sm:$0xff]  ;;  %v107_v34 = vsub.s32 0, %v106_v30  ;;  %v111_v35 = vsub.s32 1, %v106_v30 }
   0x5   :  { %62 = vmatpush1.bf16.msra.mxu0 %v47_v9  ;;  %v44_v16 = vpack.c.bf16 %v32_v14, %v30_v13  ;;  %v26_v19 = vld [vmem:[%s220_s1 + $0x8] sm:$0xff]  ;;  %v28_v20 = vld [vmem:[%s220_s1 + $0x18] sm:$0xff]  ;;  %v43_v21 = vpack.c.bf16 %v31_v18, %v29_v17  ;;  %v25_v23 = vld [vmem:[%s220_s1] sm:$0xff] }
   0x6   :  { %63 = vmatprep.subr.bf16.mxu0 %v46_v10  ;;  %v42_v22 = vpack.c.bf16 %v28_v20, %v26_v19  ;;  %v27_v24 = vld [vmem:[%s220_s1 + $0x10] sm:$0xff]  ;;  %v24_v26 = vld [vmem:[%s221_s0] sm:$0xf]  ;;  %vm127_vm3 = vmor %vm126_vm2, %vm125_vm1 }
   0x7   :  { %v41_v25 = vpack.c.bf16 %v27_v24, %v25_v23  ;;  %v103_v36 = vld [vmem:[%s222_s2] sm:$0x3] }
   0x8   :  { %v23_v29 = vld [vmem:[#allocation2 + $0x8] sm:$0xff]  ;;  %v108_v38 = vrot.slane %v103_v36, %v107_v34  ;;  %v112_v39 = vrot.slane %v103_v36, %v111_v35 }
   0x9   :  { %64 = vmatpush1.bf16.msra.mxu0 %v45_v15 }
   0xa   :  { %65 = vmatprep.subr.bf16.mxu0 %v44_v16 }
   0xd   :  { %66 = vmatpush1.bf16.msra.mxu0 %v43_v21 }
   0xe   :  { %67 = vmatprep.subr.bf16.mxu0 %v42_v22 }
  0x11   :  { %68 = vmatpush1.bf16.msra.mxu0 %v41_v25 }
  0x14   :  { %133 = vmatmul.mubr.msk.bf16.vlgmr.msra.gmra.mxu0 %vm20_vm0, %v24_v26 }
  0xd4   :  { %v87_v28 = vpop.f32.mrf.mxu0 }
  0xd5   :  { %v115_v41 = vadd.f32 %v108_v38, %v87_v28 }
  0xd6   :  { %v89_v31 = vpop.f32.mrf.mxu0 }
  0xd7   :  { %v95_v32 = vadd.f32 %v89_v31, %v23_v29 }
  0xd8   :  { %v91_v33 = vpop.f32.mrf.mxu0 }
  0xd9   :  { %97 = vst.msk [vmem:[#allocation2 + $0x8] sm:$0xff] %vm20_vm0, %v95_v32 }
  0xda   :  { %v92_v37 = vpop.f32.mrf.mxu0 }
  0xe0   :  { %v102_v40 = vld [vmem:[#allocation2 + $0x8] sm:$0xff] }
  0xe1   :  { %v116_v42 = vadd.f32 %v112_v39, %v102_v40 }
  0xe3   :  { %v135_v43 = vpack.c.bf16 %v116_v42, %v115_v41 }
  0xe5   :  { %128 = vst.msk [vmem:[%s223_s3] sm:$0xff] %vm127_vm3, %v135_v43 }

// kernel: vit_relpos_forward.19
= control target key start
LH: loop header
LB: loop body
LE: loop exit
PB: predicated region body
PF: predicated region fallthrough
CT: control target
= control target key end

     0   :  { %vm28_vm0 = vcmask 523264   ;;  %v167_v0 = vmov 0.0   ;;  %vm168_vm1 = vmmov 0   ;;  %vm136_vm2 = vcmask 519168   ;;  %s251_s1 = inlined_call_operand.vmem [shape: f32[64,64], index: 1, kind: input, shape index: {}]   ;;  %s252_s0 = inlined_call_operand.vmem [shape: bf16[8,64], index: 0, kind: input, shape index: {}]   ;;  %s253_s2 = inlined_call_operand.vmem [shape: f32[1,64], index: 2, kind: input, shape index: {}]   ;;  %s254_s3 = inlined_call_operand.vmem [shape: bf16[8,64], index: 3, kind: input, shape index: {}, may-alias: {3,6}]   ;;  %s255_s4 = inlined_call_operand.vmem [shape: f32[1,64], index: 4, kind: input, shape index: {}]   ;;  %s256_s5 = inlined_call_operand.vmem [shape: f32[1,64], index: 5, kind: input, shape index: {}]   ;;  %s257_s6 = inlined_call_operand.vmem [shape: bf16[8,64], index: 6, kind: output, shape index: {}, may-alias: {3,6}]  }
   0x1   :  { %151 = vmatprep.subr.bf16.mxu0 %v167_v0  ;;  %v38_v1 = vld [vmem:[%s251_s1 + $0x30] sm:$0xff]  ;;  %v39_v2 = vld [vmem:[%s251_s1 + $0x38] sm:$0xff]  ;;  %v36_v3 = vld [vmem:[%s251_s1 + $0x20] sm:$0xff]  ;;  %159 = vmatprep.mubr.msk.bf16.mxu0 %vm168_vm1, %v167_v0  ;;  %29 = vst.msk [vmem:[#allocation2] sm:$0xff] %vm28_vm0, %v167_v0 }
   0x2   :  { %v43_v4 = vpack.c.bf16 %v39_v2, %v38_v1  ;;  %v37_v5 = vld [vmem:[%s251_s1 + $0x28] sm:$0xff]  ;;  %v34_v7 = vld [vmem:[%s251_s1 + $0x10] sm:$0xff]  ;;  %v35_v8 = vld [vmem:[%s251_s1 + $0x18] sm:$0xff] }
   0x3   :  { %v42_v6 = vpack.c.bf16 %v37_v5, %v36_v3  ;;  %v41_v9 = vpack.c.bf16 %v35_v8, %v34_v7  ;;  %v32_v10 = vld [vmem:[%s251_s1] sm:$0xff]  ;;  %v33_v11 = vld [vmem:[%s251_s1 + $0x8] sm:$0xff] }
   0x4   :  { %152 = vmatpush3.bf16.msra.mxu0 %v43_v4  ;;  %v40_v12 = vpack.c.bf16 %v33_v11, %v32_v10  ;;  %v31_v13 = vld [vmem:[%s252_s0] sm:$0xf] }
   0x5   :  { %153 = vmatprep.subr.bf16.mxu0 %v167_v0  ;;  %v143_v20 = vld [vmem:[%s253_s2] ss:$0 sm:$0xff] }
   0x6   :  { %v144_v33 = vld [vmem:[%s255_s4] ss:$0 sm:$0xff] }
   0x7   :  { %v132_v34 = vld [vmem:[%s254_s3] sm:$0xf] }
   0x8   :  { %154 = vmatpush3.bf16.msra.mxu0 %v42_v6  ;;  %v30_v14 = vld [vmem:[#allocation2] sm:$0xff]  ;;  %v133_v37 = vunpack.c.l.bf16 %v132_v34 }
   0x9   :  { %155 = vmatprep.subr.bf16.mxu0 %v167_v0  ;;  %v145_v36 = vld [vmem:[%s256_s5] ss:$0 sm:$0xff] }
   0xc   :  { %156 = vmatpush3.bf16.msra.mxu0 %v41_v9 }
   0xd   :  { %157 = vmatprep.subr.bf16.mxu0 %v167_v0 }
  0x10   :  { %158 = vmatpush3.bf16.msra.mxu0 %v40_v12 }
  0x13   :  { %160 = vmatmul.mubr.msk.bf16.vlgmr.msra.gmra.mxu0 %vm28_vm0, %v31_v13 }
  0xd3   :  { %v82_v15 = vpop.f32.mrf.mxu0 }
  0xd4   :  { %v88_v16 = vadd.f32 %v82_v15, %v30_v14 }
  0xd5   :  { %v161_v17 = vpop.f32.mrf.mxu0 }
  0xd6   :  { %89 = vst.msk [vmem:[#allocation2] sm:$0xff] %vm28_vm0, %v88_v16 }
  0xd7   :  { %v85_v18 = vpop.f32.mrf.mxu0 }
  0xd9   :  { %v162_v19 = vpop.f32.mrf.mxu0 }
  0xdd   :  { %v93_v21 = vld [vmem:[#allocation2] sm:$0xff] }
  0xde   :  { %v101_v22 = vadd.f32 %v143_v20, %v93_v21 }
  0xe0   :  { %v104_v23 = vsel %vm28_vm0, %v101_v22, 0.0 }
  0xe1   :  { %105 = vadd.xlane.f32.xlu0 %v104_v23 }
 0x16a   :  { %v106_v24 = vpop.xlane.xlu0 %105 }
 0x16b   :  { %v108_v25 = vmul.f32 0.015625, %v106_v24 }
 0x16d   :  { %v109_v26 = vsub.f32 %v101_v22, %v108_v25 }
 0x16f   :  { %v110_v27 = vmul.f32 %v109_v26, %v109_v26 }
 0x171   :  { %v111_v28 = vsel %vm28_vm0, %v110_v27, 0.0 }
 0x172   :  { %112 = vadd.xlane.f32.xlu0 %v111_v28 }
 0x1fb   :  { %v113_v29 = vpop.xlane.xlu0 %112 }
 0x1fc   :  { %v114_v30 = vmul.f32 0.015625, %v113_v29 }
 0x1fe   :  { %v115_v31 = vadd.f32 1e-06, %v114_v30 }
 0x200   :  { %165 = vrsqrt.f32 %v115_v31 }
 0x20d   :  { %v166_v32 = vpop.eup %165 }
 0x20e   :  { %v117_v35 = vmul.f32 %v166_v32, %v109_v26 }
 0x210   :  { %v124_v38 = vmul.f32 %v144_v33, %v117_v35 }
 0x212   :  { %v131_v39 = vadd.f32 %v145_v36, %v124_v38 }
 0x214   :  { %v134_v40 = vadd.f32 %v133_v37, %v131_v39 }
 0x216   :  { %v135_v41 = vpack.c.bf16 %v134_v40, %v134_v40 }
 0x218   :  { %137 = vst.msk [vmem:[%s257_s6] sm:$0xf] %vm136_vm2, %v135_v41 }

// kernel: vit_relpos_forward.18
= control target key start
LH: loop header
LB: loop body
LE: loop exit
PB: predicated region body
PF: predicated region fallthrough
CT: control target
= control target key end

     0   :  { %s950_s24 = smov 0   ;;  %s952_s25 = smov 0   ;;  %s1038_s0 = inlined_call_operand.vmem [shape: bf16[3,2,4,4,16], index: 0, kind: input, shape index: {}, may-alias: {0,1,2}]   ;;  %s1039_s1 = inlined_call_operand.vmem [shape: bf16[3,2,4,4,16], index: 1, kind: input, shape index: {}, may-alias: {0,1,2}]   ;;  %s1040_s2 = inlined_call_operand.vmem [shape: bf16[3,2,4,4,16], index: 2, kind: input, shape index: {}, may-alias: {0,1,2}]   ;;  %s1041_s3 = inlined_call_operand.vmem [shape: f32[1,16], index: 3, kind: input, shape index: {}]   ;;  %s1042_s4 = inlined_call_operand.vmem [shape: f32[1,16], index: 4, kind: input, shape index: {}]   ;;  %s1043_s5 = inlined_call_operand.vmem [shape: f32[1,16], index: 5, kind: input, shape index: {}]   ;;  %s1044_s6 = inlined_call_operand.vmem [shape: f32[1,16], index: 6, kind: input, shape index: {}]   ;;  %s1045_s7 = inlined_call_operand.vmem [shape: bf16[2,4,4,16], index: 7, kind: output, shape index: {}]  }
   0x1   :  { %s954_s26 = smov 0   ;;  %s956_s27 = smov 0  }
   0x2   :  { %s958_s28 = smov 0  }
   0x3 LB: > { %s32_s29 = sadd.s32 1, %s896_s26  ;;  %s36_s30 = sadd.s32 1, %s900_s27  ;;  %s904_s28 = sphi %s958_s28, %s17_s28   ;;  %s900_s27 = sphi %s956_s27, %s1049_s27   ;;  %s896_s26 = sphi %s954_s26, %s1048_s26   ;;  %s892_s25 = sphi %s952_s25, %s1047_s25   ;;  %s888_s24 = sphi %s950_s24, %s1046_s24  }
   0x4   : > { %p34_p0 = scmp.ge.s32.totalorder %s32_s29, 4  ;;  %p775_p1 = scmp.ge.s32.totalorder %s904_s28, 1 }
   0x5   : > { %p305_p2 = scmp.lt.s32.totalorder %s904_s28, 9 }
   0x6   : > { %s1051_s29 = smov (%p34_p0, %s32_s29), 0  ;;  %s1053_s30 = smov (!%p34_p0, %s36_s30), %s900_s27 }
   0x7   : > { %p306_p3 = pnand %p775_p1, %p305_p2  ;;  %p38_p4 = scmp.ge.s32.totalorder %s1053_s30, 2 }
   0x8   : > { %p367_p5 = scmp.lt.s32.totalorder (!%p306_p3), %s892_s25, 1  ;;  %p369_p6 = scmp.lt.s32.totalorder (!%p306_p3), %s888_s24, 3 }
   0x9   : > { %s1055_s30 = smov (%p38_p4, %s1053_s30), 0  ;;  %309 = sbr.rel (%p306_p3) target bundleno = 1112 (0x458), region = 48 }
   0xe   : > { %s1057_s25 = smov (!%p367_p5, %s892_s25), 1  ;;  %s1059_s24 = smov (!%p369_p6, %s888_s24), 3  ;;  %vm416_vm0 = vcmask 125952   ;;  %v906_v16 = vmov 0.0   ;;  %vm907_vm1 = vmmov 0   ;;  %vm487_vm2 = vcmask 130048  }
   0xf   : > { %s776_s8 = sshll.u32 %s1057_s25, 2  ;;  %450 = vst.msk [vmem:[#allocation5] sm:$0xf] %vm416_vm0, %v906_v16  ;;  %798 = vmatprep.subr.bf16.mxu0 %v906_v16  ;;  %804 = vmatprep.subr.bf16.mxu1 %v906_v16  ;;  %v784_v24 = vld [vmem:[%s1041_s3] ss:$0 sm:$0xff]  ;;  %vm447_vm3 = vcmask 3072  }
  0x10   : > { %s372_s9 = sadd.s32 %s776_s8, %s1059_s24  ;;  %800 = vmatprep.mubr.msk.bf16.mxu0 %vm907_vm1, %v906_v16  ;;  %806 = vmatprep.mubr.msk.bf16.mxu1 %vm907_vm1, %v906_v16  ;;  %v785_v26 = vld [vmem:[%s1042_s4] ss:$0 sm:$0xff]  ;;  %v908_v40 = vmov -inf   ;;  %449 = vst.msk [vmem:[#allocation4] sm:$0xf] %vm447_vm3, %v906_v16  ;;  %vm535_vm4 = vcmask 27648  }
  0x11   : > { %s980_s10 = sshll.u32 %s372_s9, 1  ;;  %v787_v29 = vld [vmem:[%s1043_s5] ss:$0 sm:$0xff]  ;;  %448 = vst.msk [vmem:[#allocation3] sm:$0xf] %vm447_vm3, %v908_v40  ;;  %v909_v46 = vmov 0  }
  0x12   : > { %s374_s13 = scalar_lea.vmem %s1038_s0, %s980_s10  ;;  %s705_s16 = scalar_lea.vmem %s1039_s1, %s980_s10  ;;  %v788_v32 = vld [vmem:[%s1044_s6] ss:$0 sm:$0xff]  ;;  %854 = vset.pattern.permute.xlu1 %v909_v46  ;;  %855 = vset.pattern.permute.xlu0 %v909_v46  ;;  %vm572_vm5 = vcmask 1041408   ;;  %vm568_vm6 = vcmask 31744   ;;  %vm632_vm7 = vcmask 123904  }
  0x13   : > { %v412_v0 = vld [vmem:[%s374_s13] sm:$0x3]  ;;  %v786_v1 = vld [vmem:[%s705_s16 + $0x10] sm:$0x3]  ;;  %s711_s9 = scalar_lea.vmem %s1040_s2, %s980_s10  ;;  %s406_s13 = scalar_lea.vmem %s1045_s7, %s980_s10 }
  0x14   : > { %v415_v2 = vunpack.c.l.bf16 %v412_v0  ;;  %v454_v3 = vunpack.c.l.bf16 %v786_v1  ;;  %v790_v51 = vld [vmem:[%s711_s9 + $0x20] sm:$0x3] }
  0x15   : > { %v574_v52 = vsel %vm572_vm5, %v790_v51, 0 }
  0x16   : > { %v417_v4 = vsel %vm416_vm0, %v415_v2, 0.0  ;;  %v456_v5 = vsel %vm416_vm0, %v454_v3, 0.0  ;;  %805 = vmatpush3.bf16.msra.mxu1 %v574_v52 }
  0x17   : > { %418 = vadd.xlane.f32.xlu0 %v417_v4  ;;  %v551_v61 = vld [vmem:[#allocation4] sm:$0xf] }
  0x18   : > { %v534_v47 = vld [vmem:[#allocation3] sm:$0xf] }
  0x1b   : > { %457 = vadd.xlane.f32.xlu0 %v456_v5 }
  0xa0   : > { %v419_v6 = vpop.xlane.xlu0 %418 }
  0xa1   : > { %v421_v7 = vmul.f32 0.0625, %v419_v6 }
  0xa3   : > { %v422_v8 = vsub.f32 %v415_v2, %v421_v7 }
  0xa4   : > { %v458_v9 = vpop.xlane.xlu0 %457 }
  0xa5   : > { %v460_v10 = vmul.f32 0.0625, %v458_v9  ;;  %v423_v11 = vmul.f32 %v422_v8, %v422_v8 }
  0xa7   : > { %v461_v12 = vsub.f32 %v454_v3, %v460_v10  ;;  %v424_v13 = vsel %vm416_vm0, %v423_v11, 0.0  ;;  %v559_v3 = vld [vmem:[#allocation5] sm:$0xf] }
  0xa8   : > { %425 = vadd.xlane.f32.xlu1 %v424_v13 }
  0xa9   : > { %v462_v14 = vmul.f32 %v461_v12, %v461_v12 }
  0xab   : > { %v463_v15 = vsel %vm416_vm0, %v462_v14, 0.0 }
  0xac   : > { %464 = vadd.xlane.f32.xlu1 %v463_v15 }
 0x131   : > { %v426_v17 = vpop.xlane.xlu1 %425 }
 0x132   : > { %v427_v18 = vmul.f32 0.0625, %v426_v17 }
 0x134   : > { %v428_v19 = vadd.f32 1e-05, %v427_v18 }
 0x135   : > { %v465_v20 = vpop.xlane.xlu1 %464 }
 0x136   : > { %856 = vrsqrt.f32 %v428_v19  ;;  %v466_v21 = vmul.f32 0.0625, %v465_v20 }
 0x138   : > { %v467_v22 = vadd.f32 1e-05, %v466_v21 }
 0x13a   : > { %858 = vrsqrt.f32 %v467_v22 }
 0x143   : > { %v857_v23 = vpop.eup %856 }
 0x144   : > { %v430_v25 = vmul.f32 %v857_v23, %v422_v8 }
 0x146   : > { %v437_v27 = vmul.f32 %v784_v24, %v430_v25 }
 0x147   : > { %v859_v28 = vpop.eup %858 }
 0x148   : > { %v444_v30 = vadd.f32 %v785_v26, %v437_v27  ;;  %v469_v31 = vmul.f32 %v859_v28, %v461_v12 }
 0x14a   : > { %v445_v33 = vmul.f32 0.25, %v444_v30  ;;  %v476_v34 = vmul.f32 %v787_v29, %v469_v31 }
 0x14c   : > { %446 = vst.msk [vmem:[#allocation2] sm:$0xf] %vm416_vm0, %v445_v33  ;;  %v483_v35 = vadd.f32 %v788_v32, %v476_v34 }
 0x14e   : > { %v486_v36 = vpack.c.bf16 %v483_v35, %v483_v35 }
 0x150   : > { %v492_v37 = vsel %vm487_vm2, %v486_v36, 0 }
 0x151   : > { %799 = vmatpush3.bf16.xpose.msra.mxu0 %v492_v37 }
 0x153   : > { %v484_v38 = vld [vmem:[#allocation2] sm:$0xf] }
 0x154   : > { %v485_v39 = vpack.c.bf16 %v484_v38, %v484_v38 }
 0x158   : > { %801 = vmatmul.mubr.msk.bf16.vlgmr.msra.gmra.mxu0 %vm487_vm2, %v485_v39 }
 0x218   : > { %v528_v41 = vpop.f32.mrf.mxu0 }
 0x219   : > { %v536_v42 = vsel %vm535_vm4, %v528_v41, -inf }
 0x21a   : > { %537 = vmax.xlane.f32.xlu0 %v536_v42  ;;  %v802_v43 = vpop.f32.mrf.mxu0 }
 0x21c   : > { %v531_v44 = vpop.f32.mrf.mxu0 }
 0x21e   : > { %v803_v45 = vpop.f32.mrf.mxu0 }
 0x2a3   : > { %v538_v48 = vpop.xlane.xlu0 %537 }
 0x2a4   : > { %v539_v49 = vmax.f32 %v534_v47, %v538_v48 }
 0x2a6   : > { %v540_v50 = vsub.f32 %v534_v47, %v539_v49  ;;  %618 = vst.msk [vmem:[#allocation3] sm:$0xf] %vm447_vm3, %v539_v49  ;;  %545 = vperm.xlu1 %854, %v539_v49  }
 0x2a8   : > { %v541_v59 = vmul.f32 1.442695, %v540_v50 }
 0x321   : > { %v546_v53 = vpop.permute.xlu1 %545 }
 0x322   : > { %v548_v54 = vsub.f32 %v528_v41, %v546_v53 }
 0x324   : > { %v549_v55 = vmul.f32 1.442695, %v548_v54 }
 0x326   : > { %860 = vpow2.f32 %v549_v55 }
 0x327   : > { %862 = vpow2.f32 %v541_v59 }
 0x333   : > { %v861_v56 = vpop.eup %860 }
 0x334   : > { %v553_v57 = vsel %vm535_vm4, %v861_v56, 0.0  ;;  %v566_v58 = vpack.c.bf16 %v861_v56, %v861_v56  ;;  %v863_v60 = vpop.eup %862 }
 0x335   : > { %554 = vadd.xlane.f32.xlu0 %v553_v57  ;;  %v552_v62 = vmul.f32 %v863_v60, %v551_v61 }
 0x336   : > { %807 = vmatmul.mubr.msk.bf16.vlgmr.msra.gmra.mxu1 %vm568_vm6, %v566_v58 }
 0x34b   : > { %562 = vperm.xlu0 %855, %v863_v60  }
 0x3be   : > { %v555_v63 = vpop.xlane.xlu0 %554 }
 0x3bf   : > { %v556_v0 = vadd.f32 %v555_v63, %v552_v62 }
 0x3c1   : > { %558 = vst.msk [vmem:[#allocation4] sm:$0xf] %vm447_vm3, %v556_v0 }
 0x3c6   : > { %v563_v4 = vpop.permute.xlu0 %562 }
 0x3c7   : > { %v565_v5 = vmul.f32 %v563_v4, %v559_v3 }
 0x3c8   : > { %v623_v1 = vld [vmem:[#allocation4] sm:$0xf] }
 0x3c9   : > { %864 = vrcp.f32 %v623_v1 }
 0x3d6   : > { %v865_v2 = vpop.eup %864 }
 0x3d7   : > { %627 = vperm.xlu1 %854, %v865_v2  }
 0x3f6   : > { %v610_v6 = vpop.f32.mrf.mxu1 }
 0x3f7   : > { %v616_v7 = vadd.f32 %v610_v6, %v565_v5 }
 0x3f8   : > { %v808_v8 = vpop.f32.mrf.mxu1 }
 0x3f9   : > { %617 = vst.msk [vmem:[#allocation5] sm:$0xf] %vm416_vm0, %v616_v7 }
 0x3fa   : > { %v613_v9 = vpop.f32.mrf.mxu1 }
 0x3fc   : > { %v809_v10 = vpop.f32.mrf.mxu1 }
 0x400   : > { %v622_v11 = vld [vmem:[#allocation5] sm:$0xf] }
 0x452   : > { %v628_v12 = vpop.permute.xlu1 %627 }
 0x453   : > { %v630_v13 = vmul.f32 %v628_v12, %v622_v11 }
 0x455   : > { %v631_v14 = vpack.c.bf16 %v630_v13, %v630_v13 }
 0x457   : > { %633 = vst.msk [vmem:[%s406_s13] sm:$0x3] %vm632_vm7, %v631_v14 }
 0x458 PF: > { %s17_s28 = sadd.s32 1, %s904_s28   ;;  %s1046_s24 = smov %s896_s26 }
 0x459   : > { %p14_p7 = scmp.ge.s32.totalorder %s17_s28, 10   ;;  %s1047_s25 = smov %s900_s27 }
 0x45a   : > { %s1048_s26 = smov %s1051_s29  ;;  %s1049_s27 = smov %s1055_s30 }
 0x45b   :  { %16 = sbr.rel (!%p14_p7) target bundleno = 3 (0x3), region = 92 }

// kernel: vit_relpos_forward.21
= control target key start
LH: loop header
LB: loop body
LE: loop exit
PB: predicated region body
PF: predicated region fallthrough
CT: control target
= control target key end

     0   :  { %vm28_vm0 = vcmask 523264   ;;  %v214_v51 = vmov 0.0   ;;  %vm176_vm1 = vcmask 519168   ;;  %s368_s1 = inlined_call_operand.vmem [shape: f32[256,64], index: 1, kind: input, shape index: {}]   ;;  %s369_s0 = inlined_call_operand.vmem [shape: bf16[8,256], index: 0, kind: input, shape index: {}]   ;;  %s370_s2 = inlined_call_operand.vmem [shape: f32[1,64], index: 2, kind: input, shape index: {}]   ;;  %s371_s3 = inlined_call_operand.vmem [shape: bf16[8,64], index: 3, kind: input, shape index: {}, may-alias: {3,6}]   ;;  %s372_s4 = inlined_call_operand.vmem [shape: f32[1,64], index: 4, kind: input, shape index: {}]   ;;  %s373_s5 = inlined_call_operand.vmem [shape: f32[1,64], index: 5, kind: input, shape index: {}]   ;;  %s374_s6 = inlined_call_operand.vmem [shape: bf16[8,64], index: 6, kind: output, shape index: {}, may-alias: {3,6}]  }
   0x1   :  { %v62_v0 = vld [vmem:[%s368_s1 + $0xf0] sm:$0xff]  ;;  %v63_v1 = vld [vmem:[%s368_s1 + $0xf8] sm:$0xff]  ;;  %v60_v5 = vld [vmem:[%s368_s1 + $0xe0] sm:$0xff]  ;;  %29 = vst.msk [vmem:[#allocation2] sm:$0xff] %vm28_vm0, %v214_v51 }
   0x2   :  { %v46_v2 = vld [vmem:[%s368_s1 + $0x70] sm:$0xff]  ;;  %v79_v3 = vpack.c.bf16 %v63_v1, %v62_v0  ;;  %v47_v4 = vld [vmem:[%s368_s1 + $0x78] sm:$0xff]  ;;  %v61_v6 = vld [vmem:[%s368_s1 + $0xe8] sm:$0xff] }
   0x3   :  { %v71_v7 = vpack.c.bf16 %v47_v4, %v46_v2  ;;  %v78_v8 = vpack.c.bf16 %v61_v6, %v60_v5  ;;  %v44_v9 = vld [vmem:[%s368_s1 + $0x60] sm:$0xff]  ;;  %v45_v10 = vld [vmem:[%s368_s1 + $0x68] sm:$0xff]  ;;  %v58_v11 = vld [vmem:[%s368_s1 + $0xd0] sm:$0xff] }
   0x4   :  { %187 = vmatprep.subr.bf16.mxu0 %v79_v3  ;;  %v59_v12 = vld [vmem:[%s368_s1 + $0xd8] sm:$0xff]  ;;  %v70_v13 = vpack.c.bf16 %v45_v10, %v44_v9  ;;  %v42_v15 = vld [vmem:[%s368_s1 + $0x50] sm:$0xff]  ;;  %v56_v17 = vld [vmem:[%s368_s1 + $0xc0] sm:$0xff] }
   0x5   :  { %188 = vmatpush3.bf16.msra.mxu0 %v71_v7  ;;  %v77_v14 = vpack.c.bf16 %v59_v12, %v58_v11  ;;  %v43_v16 = vld [vmem:[%s368_s1 + $0x58] sm:$0xff]  ;;  %v57_v18 = vld [vmem:[%s368_s1 + $0xc8] sm:$0xff]  ;;  %v40_v21 = vld [vmem:[%s368_s1 + $0x40] sm:$0xff] }
   0x6   :  { %189 = vmatprep.subr.bf16.mxu0 %v78_v8  ;;  %v69_v19 = vpack.c.bf16 %v43_v16, %v42_v15  ;;  %v76_v20 = vpack.c.bf16 %v57_v18, %v56_v17  ;;  %v41_v22 = vld [vmem:[%s368_s1 + $0x48] sm:$0xff]  ;;  %v54_v23 = vld [vmem:[%s368_s1 + $0xb0] sm:$0xff]  ;;  %v55_v24 = vld [vmem:[%s368_s1 + $0xb8] sm:$0xff] }
   0x7   :  { %v31_v25 = vld [vmem:[%s369_s0] sm:$0xff]  ;;  %v68_v27 = vpack.c.bf16 %v41_v22, %v40_v21  ;;  %v75_v28 = vpack.c.bf16 %v55_v24, %v54_v23  ;;  %v38_v29 = vld [vmem:[%s368_s1 + $0x30] sm:$0xff]  ;;  %v39_v30 = vld [vmem:[%s368_s1 + $0x38] sm:$0xff] }
   0x8   :  { %v183_v26 = vcombine.high %v31_v25, %v31_v25  ;;  %v52_v31 = vld [vmem:[%s368_s1 + $0xa0] sm:$0xff]  ;;  %v53_v32 = vld [vmem:[%s368_s1 + $0xa8] sm:$0xff]  ;;  %v67_v33 = vpack.c.bf16 %v39_v30, %v38_v29  ;;  %v50_v37 = vld [vmem:[%s368_s1 + $0x90] sm:$0xff]  ;;  %v182_v50 = vcombine.low %v31_v25, %v31_v25 }
   0x9   :  { %190 = vmatpush3.bf16.msra.mxu0 %v70_v13  ;;  %v74_v34 = vpack.c.bf16 %v53_v32, %v52_v31  ;;  %v36_v35 = vld [vmem:[%s368_s1 + $0x20] sm:$0xff]  ;;  %v37_v36 = vld [vmem:[%s368_s1 + $0x28] sm:$0xff]  ;;  %v51_v38 = vld [vmem:[%s368_s1 + $0x98] sm:$0xff] }
   0xa   :  { %191 = vmatprep.subr.bf16.mxu0 %v77_v14  ;;  %119 = vmatprep.mubr.bf16.mxu0 %v183_v26  ;;  %v66_v39 = vpack.c.bf16 %v37_v36, %v36_v35  ;;  %v73_v40 = vpack.c.bf16 %v51_v38, %v50_v37  ;;  %v34_v41 = vld [vmem:[%s368_s1 + $0x10] sm:$0xff]  ;;  %v35_v42 = vld [vmem:[%s368_s1 + $0x18] sm:$0xff]  ;;  %v48_v43 = vld [vmem:[%s368_s1 + $0x80] sm:$0xff] }
   0xb   :  { %v49_v44 = vld [vmem:[%s368_s1 + $0x88] sm:$0xff]  ;;  %v65_v45 = vpack.c.bf16 %v35_v42, %v34_v41  ;;  %v32_v47 = vld [vmem:[%s368_s1] sm:$0xff] }
   0xc   :  { %v72_v46 = vpack.c.bf16 %v49_v44, %v48_v43  ;;  %v33_v48 = vld [vmem:[%s368_s1 + $0x8] sm:$0xff]  ;;  %v30_v53 = vld [vmem:[#allocation2] sm:$0xff] }
   0xd   :  { %192 = vmatpush3.bf16.msra.mxu0 %v69_v19  ;;  %v64_v49 = vpack.c.bf16 %v33_v48, %v32_v47  ;;  %v184_v59 = vld [vmem:[%s370_s2] ss:$0 sm:$0xff] }
   0xe   :  { %193 = vmatprep.subr.bf16.mxu0 %v76_v20  ;;  %v185_v8 = vld [vmem:[%s372_s4] ss:$0 sm:$0xff] }
   0xf   :  { %v172_v9 = vld [vmem:[%s371_s3] sm:$0xf] }
  0x10   :  { %v186_v11 = vld [vmem:[%s373_s5] ss:$0 sm:$0xff]  ;;  %v173_v12 = vunpack.c.l.bf16 %v172_v9 }
  0x11   :  { %194 = vmatpush3.bf16.msra.mxu0 %v68_v27 }
  0x12   :  { %195 = vmatprep.subr.bf16.mxu0 %v75_v28 }
  0x15   :  { %196 = vmatpush3.bf16.msra.mxu0 %v67_v33 }
  0x16   :  { %197 = vmatprep.subr.bf16.mxu0 %v74_v34 }
  0x19   :  { %198 = vmatpush3.bf16.msra.mxu0 %v66_v39 }
  0x1a   :  { %199 = vmatprep.subr.bf16.mxu0 %v73_v40 }
  0x1d   :  { %200 = vmatpush3.bf16.msra.mxu0 %v65_v45 }
  0x1e   :  { %201 = vmatprep.subr.bf16.mxu0 %v72_v46 }
  0x21   :  { %202 = vmatpush3.bf16.msra.mxu0 %v64_v49 }
  0x24   :  { %120 = vmatmul.mubr.bf16.vlgmr.msra.gmra.mxu0 %v182_v50 }
  0xe4   :  { %v203_v52 = vpop.f32.mrf.mxu0 }
  0xe6   :  { %v204_v54 = vpop.f32.mrf.mxu0 }
  0xe7   :  { %v205_v55 = vadd.f32 %v204_v54, %v203_v52 }
  0xe8   :  { %v206_v56 = vpop.f32.mrf.mxu0 }
  0xe9   :  { %v127_v57 = vadd.f32 %v205_v55, %v30_v53 }
  0xea   :  { %v207_v58 = vpop.f32.mrf.mxu0 }
  0xeb   :  { %129 = vst.msk [vmem:[#allocation2] sm:$0xff] %vm28_vm0, %v127_v57 }
  0xf2   :  { %v133_v60 = vld [vmem:[#allocation2] sm:$0xff] }
  0xf3   :  { %v141_v61 = vadd.f32 %v184_v59, %v133_v60 }
  0xf5   :  { %v144_v62 = vsel %vm28_vm0, %v141_v61, 0.0 }
  0xf6   :  { %145 = vadd.xlane.f32.xlu0 %v144_v62 }
 0x17f   :  { %v146_v63 = vpop.xlane.xlu0 %145 }
 0x180   :  { %v148_v0 = vmul.f32 0.015625, %v146_v63 }
 0x182   :  { %v149_v1 = vsub.f32 %v141_v61, %v148_v0 }
 0x184   :  { %v150_v2 = vmul.f32 %v149_v1, %v149_v1 }
 0x186   :  { %v151_v3 = vsel %vm28_vm0, %v150_v2, 0.0 }
 0x187   :  { %152 = vadd.xlane.f32.xlu0 %v151_v3 }
 0x210   :  { %v153_v4 = vpop.xlane.xlu0 %152 }
 0x211   :  { %v154_v5 = vmul.f32 0.015625, %v153_v4 }
 0x213   :  { %v155_v6 = vadd.f32 1e-06, %v154_v5 }
 0x215   :  { %212 = vrsqrt.f32 %v155_v6 }
 0x222   :  { %v213_v7 = vpop.eup %212 }
 0x223   :  { %v157_v10 = vmul.f32 %v213_v7, %v149_v1 }
 0x225   :  { %v164_v13 = vmul.f32 %v185_v8, %v157_v10 }
 0x227   :  { %v171_v14 = vadd.f32 %v186_v11, %v164_v13 }
 0x229   :  { %v174_v15 = vadd.f32 %v173_v12, %v171_v14 }
 0x22b   :  { %v175_v16 = vpack.c.bf16 %v174_v15, %v174_v15 }
 0x22d   :  { %177 = vst.msk [vmem:[%s374_s6] sm:$0xf] %vm176_vm1, %v175_v16 }

// kernel: vit_relpos_forward.20
= control target key start
LH: loop header
LB: loop body
LE: loop exit
PB: predicated region body
PF: predicated region fallthrough
CT: control target
= control target key end

     0   :  { %v194_v3 = vmov 0   ;;  %vm48_vm0 = vcmask 523264   ;;  %v104_v26 = vlaneseq  ;;  %s273_s1 = inlined_call_operand.vmem [shape: f32[64,256], index: 1, kind: input, shape index: {}]   ;;  %s274_s0 = inlined_call_operand.vmem [shape: bf16[8,64], index: 0, kind: input, shape index: {}]   ;;  %s275_s2 = inlined_call_operand.vmem [shape: f32[1,256], index: 2, kind: input, shape index: {}]   ;;  %s276_s3 = inlined_call_operand.vmem [shape: bf16[8,256], index: 3, kind: output, shape index: {}]  }
   0x1   :  { %v37_v0 = vld [vmem:[%s273_s1 + $0x68] sm:$0xff]  ;;  %v39_v1 = vld [vmem:[%s273_s1 + $0x78] sm:$0xff]  ;;  %v36_v2 = vld [vmem:[%s273_s1 + $0x60] sm:$0xff]  ;;  %84 = vmatprep.mubr.bf16.mxu0 %v194_v3 }
   0x2   :  { %v47_v4 = vpack.c.bf16 %v39_v1, %v37_v0  ;;  %v38_v5 = vld [vmem:[%s273_s1 + $0x70] sm:$0xff]  ;;  %v33_v6 = vld [vmem:[%s273_s1 + $0x48] sm:$0xff]  ;;  %v35_v7 = vld [vmem:[%s273_s1 + $0x58] sm:$0xff]  ;;  %v105_v27 = vshrl.u32 %v104_v26, 7 }
   0x3   :  { %v46_v8 = vpack.c.bf16 %v38_v5, %v36_v2  ;;  %v45_v9 = vpack.c.bf16 %v35_v7, %v33_v6  ;;  %v32_v10 = vld [vmem:[%s273_s1 + $0x40] sm:$0xff]  ;;  %v34_v11 = vld [vmem:[%s273_s1 + $0x50] sm:$0xff]  ;;  %v29_v12 = vld [vmem:[%s273_s1 + $0x28] sm:$0xff] }
   0x4   :  { %60 = vmatprep.subr.bf16.mxu0 %v47_v4  ;;  %v31_v13 = vld [vmem:[%s273_s1 + $0x38] sm:$0xff]  ;;  %v44_v14 = vpack.c.bf16 %v34_v11, %v32_v10  ;;  %v28_v16 = vld [vmem:[%s273_s1 + $0x20] sm:$0xff]  ;;  %v30_v17 = vld [vmem:[%s273_s1 + $0x30] sm:$0xff]  ;;  %v106_v28 = vsub.s32 0, %v105_v27  ;;  %v110_v30 = vsub.s32 1, %v105_v27 }
   0x5   :  { %61 = vmatpush1.bf16.msra.mxu0 %v46_v8  ;;  %v43_v15 = vpack.c.bf16 %v31_v13, %v29_v12  ;;  %v25_v18 = vld [vmem:[%s273_s1 + $0x8] sm:$0xff]  ;;  %v27_v19 = vld [vmem:[%s273_s1 + $0x18] sm:$0xff]  ;;  %v42_v20 = vpack.c.bf16 %v30_v17, %v28_v16  ;;  %v24_v22 = vld [vmem:[%s273_s1] sm:$0xff]  ;;  %v195_v13 = vmov -1.0  }
   0x6   :  { %62 = vmatprep.subr.bf16.mxu0 %v45_v9  ;;  %v41_v21 = vpack.c.bf16 %v27_v19, %v25_v18  ;;  %v26_v23 = vld [vmem:[%s273_s1 + $0x10] sm:$0xff]  ;;  %v23_v25 = vld [vmem:[%s274_s0] sm:$0xf] }
   0x7   :  { %v40_v24 = vpack.c.bf16 %v26_v23, %v24_v22  ;;  %v102_v29 = vld [vmem:[%s275_s2] sm:$0x3] }
   0x8   :  { %v107_v31 = vrot.slane %v102_v29, %v106_v28  ;;  %v111_v32 = vrot.slane %v102_v29, %v110_v30 }
   0x9   :  { %63 = vmatpush1.bf16.msra.mxu0 %v44_v14 }
   0xa   :  { %64 = vmatprep.subr.bf16.mxu0 %v43_v15 }
   0xd   :  { %65 = vmatpush1.bf16.msra.mxu0 %v42_v20 }
   0xe   :  { %66 = vmatprep.subr.bf16.mxu0 %v41_v21 }
  0x11   :  { %67 = vmatpush1.bf16.msra.mxu0 %v40_v24 }
  0x14   :  { %181 = vmatmul.mubr.msk.bf16.vlgmr.msra.gmra.mxu0 %vm48_vm0, %v23_v25 }
  0xd4   :  { %v86_v33 = vpop.f32.mrf.mxu0 }
  0xd5   :  { %v114_v34 = vadd.f32 %v107_v31, %v86_v33 }
  0xd6   :  { %v88_v35 = vpop.f32.mrf.mxu0 }
  0xd7   :  { %v118_v36 = vmul.f32 0.70710677, %v114_v34  ;;  %v115_v37 = vadd.f32 %v111_v32, %v88_v35  ;;  %v116_v21 = vmul.f32 0.5, %v114_v34 }
  0xd8   :  { %v90_v38 = vpop.f32.mrf.mxu0 }
  0xd9   :  { %v124_v39 = vand.u32 2147483647, %v118_v36  ;;  %v119_v40 = vmul.f32 0.70710677, %v115_v37  ;;  %vm120_vm1 = vcmp.ge.f32.partialorder %v118_v36, 0.0  ;;  %v117_v22 = vmul.f32 0.5, %v115_v37 }
  0xda   :  { %v91_v41 = vpop.f32.mrf.mxu0  ;;  %v122_v14 = vsel %vm120_vm1, 1.0, %v195_v13 }
  0xdb   :  { %v126_v42 = vmul.f32 0.3275911, %v124_v39  ;;  %v125_v43 = vand.u32 2147483647, %v119_v40  ;;  %v150_v47 = vsub.f32 0.0, %v124_v39  ;;  %vm121_vm2 = vcmp.ge.f32.partialorder %v119_v40, 0.0 }
  0xdc   :  { %v123_v18 = vsel %vm121_vm2, 1.0, %v195_v13 }
  0xdd   :  { %v128_v44 = vadd.f32 1.0, %v126_v42  ;;  %v127_v45 = vmul.f32 0.3275911, %v125_v43  ;;  %v151_v48 = vsub.f32 0.0, %v125_v43  ;;  %v152_v49 = vmul.f32 %v150_v47, %v124_v39 }
  0xdf   :  { %186 = vrcp.f32 %v128_v44  ;;  %v129_v46 = vadd.f32 1.0, %v127_v45  ;;  %v153_v51 = vmul.f32 %v151_v48, %v125_v43  ;;  %v154_v53 = vmul.f32 1.442695, %v152_v49 }
  0xe1   :  { %188 = vrcp.f32 %v129_v46  ;;  %v156_v57 = vmul.f32 1.442695, %v153_v51 }
  0xe2   :  { %190 = vpow2.f32 %v154_v53 }
  0xe3   :  { %192 = vpow2.f32 %v156_v57 }
  0xec   :  { %v187_v50 = vpop.eup %186 }
  0xed   :  { %v132_v52 = vmul.f32 1.0614054, %v187_v50 }
  0xee   :  { %v189_v54 = vpop.eup %188 }
  0xef   :  { %v134_v55 = vadd.f32 -1.4531521, %v132_v52  ;;  %v133_v56 = vmul.f32 1.0614054, %v189_v54  ;;  %v191_v7 = vpop.eup %190 }
  0xf0   :  { %v193_v11 = vpop.eup %192 }
  0xf1   :  { %v136_v58 = vmul.f32 %v187_v50, %v134_v55  ;;  %v135_v59 = vadd.f32 -1.4531521, %v133_v56 }
  0xf3   :  { %v138_v60 = vadd.f32 1.4214138, %v136_v58  ;;  %v137_v61 = vmul.f32 %v189_v54, %v135_v59 }
  0xf5   :  { %v140_v62 = vmul.f32 %v187_v50, %v138_v60  ;;  %v139_v63 = vadd.f32 1.4214138, %v137_v61 }
  0xf7   :  { %v142_v0 = vadd.f32 -0.28449672, %v140_v62  ;;  %v141_v1 = vmul.f32 %v189_v54, %v139_v63 }
  0xf9   :  { %v144_v2 = vmul.f32 %v187_v50, %v142_v0  ;;  %v143_v3 = vadd.f32 -0.28449672, %v141_v1 }
  0xfb   :  { %v146_v4 = vadd.f32 0.2548296, %v144_v2  ;;  %v145_v5 = vmul.f32 %v189_v54, %v143_v3 }
  0xfd   :  { %v148_v6 = vmul.f32 %v187_v50, %v146_v4  ;;  %v147_v8 = vadd.f32 0.2548296, %v145_v5 }
  0xff   :  { %v158_v9 = vmul.f32 %v191_v7, %v148_v6  ;;  %v149_v10 = vmul.f32 %v189_v54, %v147_v8 }
 0x101   :  { %v160_v12 = vsub.f32 1.0, %v158_v9  ;;  %v159_v15 = vmul.f32 %v193_v11, %v149_v10 }
 0x103   :  { %v162_v16 = vmul.f32 %v160_v12, %v122_v14  ;;  %v161_v17 = vsub.f32 1.0, %v159_v15 }
 0x105   :  { %v164_v19 = vadd.f32 1.0, %v162_v16  ;;  %v163_v20 = vmul.f32 %v161_v17, %v123_v18 }
 0x107   :  { %v165_v23 = vadd.f32 1.0, %v163_v20  ;;  %v166_v24 = vmul.f32 %v164_v19, %v116_v21 }
 0x109   :  { %v167_v25 = vmul.f32 %v165_v23, %v117_v22 }
 0x10b   :  { %v183_v26 = vpack.c.bf16 %v167_v25, %v166_v24 }
 0x10d   :  { %176 = vst [vmem:[%s276_s3] sm:$0xff] %v183_v26 }

// kernel: vit_relpos_forward.27
= control target key start
LH: loop header
LB: loop body
LE: loop exit
PB: predicated region body
PF: predicated region fallthrough
CT: control target
= control target key end

     0   :  { %10 = vsyncpa [#allocation4], 0  ;;  %s530_s18 = smov 0   ;;  %s598_s0 = inlined_call_operand.vmem [shape: bf16[2,4,64], index: 0, kind: input, shape index: {}]   ;;  %s599_s1 = inlined_call_operand.vmem [shape: f32[1,64], index: 1, kind: input, shape index: {}]   ;;  %s600_s2 = inlined_call_operand.vmem [shape: f32[1,64], index: 2, kind: input, shape index: {}]   ;;  %s601_s3 = inlined_call_operand.vmem [shape: f32[64,3], index: 3, kind: input, shape index: {}]   ;;  %s602_s4 = inlined_call_operand.vmem [shape: f32[1,3], index: 4, kind: input, shape index: {}]   ;;  %s603_s5 = inlined_call_operand.hbm [shape: f32[2,3], index: 5, kind: output, shape index: {}]  }
   0x1 LB: > { %s536_s19 = sadd.s32 4294967295, %s495_s18   ;;  %p399_p0 = scmp.ge.s32.totalorder %s495_s18, 1  ;;  %s495_s18 = sphi %s530_s18, %s16_s18  }
   0x2   : > { %p182_p1 = scmp.lt.s32.totalorder %s495_s18, 3 }
   0x4   : > { %p183_p2 = pnand %p399_p0, %p182_p1 }
   0x5   : > { %p204_p3 = scmp.lt.s32.totalorder (!%p183_p2), %s536_s19, 1  ;;  %s411_s29 = scalar_lea.vmem (!%p183_p2), [#allocation2], %s495_s18 }
   0x6   : > { %186 = sbr.rel (%p183_p2) target bundleno = 570 (0x23a), region = 40  ;;  %p404_p4 = scmp.ne.s32.totalorder (!%p183_p2), %s536_s19, 1 }
   0xb   : > { %s205_s20 = scalar_select %p204_p3, %s536_s19, 1  ;;  %vm212_vm0 = vcmask 519168   ;;  %v401_v12 = vld [vmem:[%s599_s1] ss:$0 sm:$0xff]  ;;  %vm251_vm1 = vcmask 516096  }
   0xc   : > { %v402_v14 = vld [vmem:[%s600_s2] ss:$0 sm:$0xff] }
   0xd   : > { %s400_s21 = sshll.u32 %s205_s20, 1 }
   0xe   : > { %s207_s24 = scalar_lea.vmem %s598_s0, %s400_s21 }
   0xf   : > { %v208_v0 = vld [vmem:[%s207_s24] sm:$0x3] }
  0x10   : > { %v211_v1 = vunpack.c.l.bf16 %v208_v0 }
  0x12   : > { %v213_v2 = vsel %vm212_vm0, %v211_v1, 0.0 }
  0x13   : > { %214 = vadd.xlane.f32.xlu0 %v213_v2 }
  0x9c   : > { %v215_v3 = vpop.xlane.xlu0 %214 }
  0x9d   : > { %v217_v4 = vmul.f32 0.015625, %v215_v3 }
  0x9f   : > { %v218_v5 = vsub.f32 %v211_v1, %v217_v4 }
  0xa1   : > { %v219_v6 = vmul.f32 %v218_v5, %v218_v5 }
  0xa3   : > { %v220_v7 = vsel %vm212_vm0, %v219_v6, 0.0 }
  0xa4   : > { %221 = vadd.xlane.f32.xlu0 %v220_v7 }
 0x12d   : > { %v222_v8 = vpop.xlane.xlu0 %221 }
 0x12e   : > { %v223_v9 = vmul.f32 0.015625, %v222_v8 }
 0x130   : > { %v224_v10 = vadd.f32 1e-06, %v223_v9 }
 0x132   : > { %459 = vrsqrt.f32 %v224_v10 }
 0x13f   : > { %v460_v11 = vpop.eup %459 }
 0x140   : > { %v226_v13 = vmul.f32 %v460_v11, %v218_v5 }
 0x142   : > { %v233_v15 = vmul.f32 %v401_v12, %v226_v13 }
 0x144   : > { %v240_v16 = vadd.f32 %v402_v14, %v233_v15 }
 0x146   : > { %v241_v17 = vsel %vm212_vm0, %v240_v16, 0.0 }
 0x147   : > { %v242_v18 = vrot.slane %v241_v17, 4 }
 0x149   : > { %v243_v19 = vadd.f32 %v242_v18, %v241_v17 }
 0x14b   : > { %v244_v20 = vrot.slane %v243_v19, 2 }
 0x14d   : > { %v245_v21 = vadd.f32 %v244_v20, %v243_v19 }
 0x14f   : > { %v246_v22 = vrot.slane %v245_v21, 1 }
 0x151   : > { %v247_v23 = vadd.f32 %v246_v22, %v245_v21  ;;  %256 = sbr.rel (%p404_p4) target bundleno = 555 (0x22b), region = 44 }
 0x153   : > { %v249_v24 = vmul.f32 0.25, %v247_v23 }
 0x155   : > { %413 = vst.msk [vmem:[%s411_s29 - $0x1] sm:$0x1] %vm251_vm1, %v249_v24 }
 0x156   : > { %v265_v25 = vld [vmem:[%s601_s3 + $0x38] sm:$0xff]  ;;  %v497_v26 = vmov 0.0   ;;  %v264_v27 = vld [vmem:[%s601_s3 + $0x30] sm:$0xff]  ;;  %vm498_vm2 = vmmov 0   ;;  %v263_v28 = vld [vmem:[%s601_s3 + $0x28] sm:$0xff]  ;;  %vm273_vm3 = vcmask 523264  }
 0x157   : > { %423 = vmatprep.subr.mxu0 %v497_v26  ;;  %439 = vmatprep.mubr.msk.f32.mxu0 %vm498_vm2, %v497_v26  ;;  %v262_v29 = vld [vmem:[%s601_s3 + $0x20] sm:$0xff]  ;;  %v261_v30 = vld [vmem:[%s601_s3 + $0x18] sm:$0xff]  ;;  %v260_v31 = vld [vmem:[%s601_s3 + $0x10] sm:$0xff]  ;;  %vm347_vm4 = vcmask 17408  }
 0x158   : > { %424 = vmatpush3.msra.mxu0 %v265_v25  ;;  %v259_v32 = vld [vmem:[%s601_s3 + $0x8] sm:$0xff]  ;;  %v258_v33 = vld [vmem:[%s601_s3] sm:$0xff] }
 0x159   : > { %425 = vmatprep.subr.mxu0 %v497_v26  ;;  %v405_v35 = vld [vmem:[%s602_s4] ss:$0 sm:$0xff] }
 0x15a   : > { %426 = vmatpush3.msra.mxu0 %v264_v27 }
 0x15b   : > { %427 = vmatprep.subr.mxu0 %v497_v26 }
 0x15c   : > { %428 = vmatpush3.msra.mxu0 %v263_v28  ;;  %v257_v34 = vld [vmem:[#allocation2] sm:$0x3] }
 0x15d   : > { %429 = vmatprep.subr.mxu0 %v497_v26 }
 0x15e   : > { %430 = vmatpush3.msra.mxu0 %v262_v29 }
 0x15f   : > { %431 = vmatprep.subr.mxu0 %v497_v26 }
 0x160   : > { %432 = vmatpush3.msra.mxu0 %v261_v30 }
 0x161   : > { %433 = vmatprep.subr.mxu0 %v497_v26 }
 0x162   : > { %434 = vmatpush3.msra.mxu0 %v260_v31 }
 0x163   : > { %435 = vmatprep.subr.mxu0 %v497_v26 }
 0x164   : > { %436 = vmatpush3.msra.mxu0 %v259_v32 }
 0x165   : > { %437 = vmatprep.subr.mxu0 %v497_v26 }
 0x166   : > { %438 = vmatpush3.msra.mxu0 %v258_v33 }
 0x167   : > { %440 = vmatmul.mubr.msk.f32.vlgmr.msra.gmra.mxu0 %vm273_vm3, %v257_v34 }
 0x227   : > { %v343_v36 = vpop.f32.mrf.mxu0 }
 0x228   : > { %v344_v37 = vadd.f32 %v405_v35, %v343_v36 }
 0x229   : > { %v441_v38 = vpop.f32.mrf.mxu0 }
 0x22a   : > { %348 = vst.msk [vmem:[#allocation3] sm:$0x3] %vm347_vm4, %v344_v37 }
 0x22b PF: > { %p446_p5 = scmp.eq.s32.totalorder %s536_s19, 1  ;;  %s499_s25 = smov [#allocation3]  }
 0x22c   : > { %s356_s26 = sshll.u32 %s499_s25, 4  ;;  %s357_s26 = int_to_ptr.vmem [resolvable:$true] %s356_s26 }
 0x22d   : > { %s461_s27 = scalar_lea.vmem %s357_s26, 32  ;;  %p468_p9 = scmp.lt.s32.totalorder %s357_s26, %s357_s26 }
 0x22e   : > { %p462_p6 = scmp.ne.s32.totalorder %s357_s26, %s461_s27  ;;  %p469_p10 = scmp.lt.s32.totalorder %s461_s27, %s461_s27 }
 0x230   : > { %p463_p7 = pnand %p462_p6, %p446_p5  ;;  %p470_p11 = por %p469_p10, %p468_p9 }
 0x232   : > { %p464_p8 = pneg %p463_p7 }
 0x234   : > { %p471_p12 = pnand %p470_p11, %p464_p8 }
 0x236   : > { %474 = shalt.err (!%p471_p12)
}
 0x237   : > { %443 = dma.vmem_to_hbm [thread:$0]  (%p446_p5), %s357_s26, 32, %s603_s5, [#allocation4]  }
 0x238   : > { %490 = dma.done.wait (%p446_p5), [#allocation4], 32  }
 0x239   : > { %492 = vsyncadd (%p446_p5), [#allocation4], 4294967264 }
 0x23a PF: > { %s16_s18 = sadd.s32 1, %s495_s18  }
 0x23b   : > { %p13_p13 = scmp.ge.s32.totalorder %s16_s18, 4  }
 0x23d   :  { %15 = sbr.rel (!%p13_p13) target bundleno = 1 (0x1), region = 72 }
 0x242   :  { %369 = vsyncpa [#allocation4], 1 }
 0x243   :  { %371 = vsyncpa [#allocation4 + $0x1], 1 }

</bundles_post_ra>
